<compile_context>
chip_gen: v5e
topology: v5e:2x2
jax: 0.10.0
libtpu: 0.0.40
codegen_flags: <defaults>
</compile_context>

<pallas_src>
import functools
import math

import jax
import jax.numpy as jnp
import numpy as np
from jax import lax
from jax.experimental import pallas as pl
from jax.experimental.pallas import tpu as pltpu

# --- model hyper-params (small, consistent with the module) ---
BATCH = 2
SEQ = 8
D_MODEL = 32
FFN_HIDDEN = 64
NUM_HEADS = 4
HEAD_DIM = D_MODEL // NUM_HEADS
LN_EPS = 1e-5  # torch.nn.LayerNorm default


def _layer_norm(x, gamma, beta):
    mean = jnp.mean(x, axis=-1, keepdims=True)
    var = jnp.mean((x - mean) ** 2, axis=-1, keepdims=True)
    return (x - mean) * lax.rsqrt(var + LN_EPS) * gamma + beta


def encoder_block_kernel(valid_len_ref,              # scalar-prefetch (SMEM): (B,) int32
                         x_ref,                      # (nb*S, D)
                         wqkv_t_ref,                 # (3D, D)  torch (out,in): [Wq; Wk; Wv]
                         wo_ref,                     # (D, D)   (in, out) so y = ctx @ wo
                         ln1_g_ref, ln1_b_ref,       # (1, D)
                         w1_ref, b1_ref,             # (D, F), (1, F)
                         w2_ref, b2_ref,             # (F, D), (1, D)
                         ln2_g_ref, ln2_b_ref,       # (1, D)
                         out_ref,                    # (nb*S, D)
                         *, nb):
    x = x_ref[...]                                   # (nb*S, D)
    base = pl.program_id(0) * nb                     # first batch element of this block
    scale = 1.0 / math.sqrt(HEAD_DIM)

    # key-position iota, shared by every batch element / head (hoisted)
    key_pos = lax.broadcasted_iota(jnp.int32, (SEQ, SEQ), 1)

    attn_parts = []
    for b in range(nb):
        xb = x[b * SEQ:(b + 1) * SEQ, :]             # sublane slice of x: free

        # one MXU push: qkv^T = W_qkv_torch @ xb^T -> (3D, S)  (A @ B^T pattern)
        qkvT = lax.dot_general(wqkv_t_ref[...], xb, (((1,), (1,)), ((), ())),
                               preferred_element_type=jnp.float32)

        # padding mask for this batch element (hoisted out of the head loop)
        pad_mask = key_pos >= valid_len_ref[base + b]          # (S, S)

        ctx_parts = []
        # Per-head q/k/v are sublane-tile-aligned views of qkvT (no relayouts);
        # the per-head dots below are emitted as back-to-back MXU pushes
        # (equivalent to a head-batched dot_general at this size).
        for h in range(NUM_HEADS):
            r0 = h * HEAD_DIM
            qT_h = qkvT[r0:r0 + HEAD_DIM, :]                           # (hd, S)
            kT_h = qkvT[D_MODEL + r0:D_MODEL + r0 + HEAD_DIM, :]      # (hd, S)
            vT_h = qkvT[2 * D_MODEL + r0:2 * D_MODEL + r0 + HEAD_DIM, :]

            # scores[i,j] = sum_d q[i,d] k[j,d]   (A^T @ B pattern)
            scores = lax.dot_general(qT_h, kT_h, (((0,), (0,)), ((), ())),
                                     preferred_element_type=jnp.float32)  # (S, S)
            scores = jnp.where(pad_mask, -1000000.0, scores * scale)

            # explicit softmax; divide -> EUP reciprocal + one Newton step (VPU)
            m = jnp.max(scores, axis=-1, keepdims=True)
            e = jnp.exp(scores - m)
            s = jnp.sum(e, axis=-1, keepdims=True)
            inv = pl.reciprocal(s, approx=True)
            inv = inv * (2.0 - s * inv)          # Newton step keeps f32 accuracy
            attn = e * inv                       # (S, S)

            # ctx^T[d,i] = sum_j v^T[d,j] attn[i,j]   (A @ B^T pattern)
            ctx_parts.append(
                lax.dot_general(vT_h, attn, (((1,), (1,)), ((), ())),
                                preferred_element_type=jnp.float32))      # (hd, S)

        # merge heads along the sublane axis (free) -> (D, S)
        ctxT = jnp.concatenate(ctx_parts, axis=0)

        # single output projection per batch element: (ctx^T)^T @ Wo -> (S, D)
        attn_parts.append(
            lax.dot_general(ctxT, wo_ref[...], (((0,), (0,)), ((), ())),
                            preferred_element_type=jnp.float32))

    attn_out = attn_parts[0] if nb == 1 else jnp.concatenate(attn_parts, axis=0)

    # --- AddNorm 1 (dropout = identity) ---
    y1 = _layer_norm(x + attn_out, ln1_g_ref[0], ln1_b_ref[0])

    # --- position-wise FFN over all rows of the block ---
    h1 = jnp.maximum(
        jnp.dot(y1, w1_ref[...], preferred_element_type=jnp.float32) + b1_ref[0],
        0.0)
    ffn_out = jnp.dot(h1, w2_ref[...], preferred_element_type=jnp.float32) + b2_ref[0]

    # --- AddNorm 2 ---
    out_ref[...] = _layer_norm(y1 + ffn_out, ln2_g_ref[0], ln2_b_ref[0])


def _split_batch_over_grid():
    """True only on multi-TensorCore chips (v7x): put batch on a parallel grid
    axis to feed both TCs.  On single-TC v5e/v6e extra grid steps are pure
    overhead, so keep the grid collapsed there."""
    try:
        kind = jax.devices()[0].device_kind.lower()
    except Exception:
        return False
    return ("v7" in kind) or ("7x" in kind)


def pack_params(p):
    """One-time packing of kernel weights (kept OUT of the per-call path)."""
    return {
        # torch (out, in) orientation: rows 0..D-1 -> Wq, D..2D-1 -> Wk, 2D.. -> Wv
        "wqkv_t": jnp.concatenate([p["wq"].T, p["wk"].T, p["wv"].T], axis=0),
        "wo": p["wo"],
        "ln1_g": p["ln1_g"], "ln1_b": p["ln1_b"],
        "w1": p["w1"], "b1": p["b1"], "w2": p["w2"], "b2": p["b2"],
        "ln2_g": p["ln2_g"], "ln2_b": p["ln2_b"],
    }


def encoder_block(x, valid_len, kparams):
    B, S, D = x.shape
    split = _split_batch_over_grid()
    nb = 1 if split else B                      # batch elements per grid step
    grid = (B // nb,)

    weight_args = (
        kparams["wqkv_t"], kparams["wo"],
        kparams["ln1_g"], kparams["ln1_b"],
        kparams["w1"], kparams["b1"], kparams["w2"], kparams["b2"],
        kparams["ln2_g"], kparams["ln2_b"],
    )
    x2 = x.reshape(B * S, D)

    def invariant_spec(shape):
        zeros = (0,) * len(shape)
        return pl.BlockSpec(shape, lambda i, vl, _z=zeros: _z)

    in_specs = [pl.BlockSpec((nb * S, D), lambda i, vl: (i, 0))]
    in_specs += [invariant_spec(w.shape) for w in weight_args]

    grid_spec = pltpu.PrefetchScalarGridSpec(
        num_scalar_prefetch=1,
        grid=grid,
        in_specs=in_specs,
        out_specs=pl.BlockSpec((nb * S, D), lambda i, vl: (i, 0)),
    )

    # advisory cost hint so XLA can overlap this tiny custom call
    flops = (B * (2 * S * D * 3 * D                                  # fused QKV^T
                  + NUM_HEADS * 2 * (2 * S * S * HEAD_DIM)           # scores + ctx
                  + 2 * S * D * D)                                   # Wo
             + 2 * (B * S) * D * FFN_HIDDEN * 2)                     # FFN
    weight_elems = sum(int(np.prod(w.shape)) for w in weight_args)
    cost = pl.CostEstimate(
        flops=flops,
        transcendentals=B * NUM_HEADS * S * (S + 1) + 4 * B * S,
        bytes_accessed=4 * (2 * B * S * D + weight_elems) + 4 * B)

    out2 = pl.pallas_call(
        functools.partial(encoder_block_kernel, nb=nb),
        out_shape=jax.ShapeDtypeStruct((B * S, D), jnp.float32),
        grid_spec=grid_spec,
        compiler_params=pltpu.CompilerParams(
            dimension_semantics=("parallel",)),
        cost_estimate=cost,
    )(valid_len, x2, *weight_args)
    return out2.reshape(B, S, D)


# ---------------- pure-JAX reference for verification ----------------
def encoder_block_ref(x, valid_len, p):
    B, S, D = x.shape
    q = x @ p["wq"]
    k = x @ p["wk"]
    v = x @ p["wv"]

    def split(t):  # (B,S,D) -> (B,H,S,hd)
        return t.reshape(B, S, NUM_HEADS, HEAD_DIM).transpose(0, 2, 1, 3)

    qh, kh, vh = split(q), split(k), split(v)
    scores = jnp.einsum("bhqd,bhkd->bhqk", qh, kh) / math.sqrt(HEAD_DIM)
    col = jnp.arange(S)[None, None, None, :]
    mask = col >= valid_len[:, None, None, None]
    scores = jnp.where(mask, -1000000.0, scores)
    attn = jax.nn.softmax(scores, axis=-1)
    ctx = jnp.einsum("bhqk,bhkd->bhqd", attn, vh)
    ctx = ctx.transpose(0, 2, 1, 3).reshape(B, S, D)
    attn_out = ctx @ p["wo"]

    def ln(t, g, b_):
        m = t.mean(-1, keepdims=True)
        var = ((t - m) ** 2).mean(-1, keepdims=True)
        return (t - m) / jnp.sqrt(var + LN_EPS) * g + b_

    y1 = ln(x + attn_out, p["ln1_g"][0], p["ln1_b"][0])
    f = jnp.maximum(y1 @ p["w1"] + p["b1"][0], 0.0) @ p["w2"] + p["b2"][0]
    return ln(y1 + f, p["ln2_g"][0], p["ln2_b"][0])


def init_params(key):
    ks = jax.random.split(key, 8)

    def w(k, shape, fan_in):
        bound = 1.0 / math.sqrt(fan_in)
        return jax.random.uniform(k, shape, jnp.float32, -bound, bound)

    return {
        "wq": w(ks[0], (D_MODEL, D_MODEL), D_MODEL),
        "wk": w(ks[1], (D_MODEL, D_MODEL), D_MODEL),
        "wv": w(ks[2], (D_MODEL, D_MODEL), D_MODEL),
        "wo": w(ks[3], (D_MODEL, D_MODEL), D_MODEL),
        "ln1_g": jnp.ones((1, D_MODEL), jnp.float32),
        "ln1_b": jnp.zeros((1, D_MODEL), jnp.float32),
        "w1": w(ks[4], (D_MODEL, FFN_HIDDEN), D_MODEL),
        "b1": w(ks[5], (1, FFN_HIDDEN), D_MODEL),
        "w2": w(ks[6], (FFN_HIDDEN, D_MODEL), FFN_HIDDEN),
        "b2": w(ks[7], (1, D_MODEL), FFN_HIDDEN),
        "ln2_g": jnp.ones((1, D_MODEL), jnp.float32),
        "ln2_b": jnp.zeros((1, D_MODEL), jnp.float32),
    }


if __name__ == "__main__":
    key = jax.random.PRNGKey(0)
    kx, kp = jax.random.split(key)
    x = jax.random.normal(kx, (BATCH, SEQ, D_MODEL), jnp.float32)
    valid_len = jnp.array([5, 3], dtype=jnp.int32)   # key valid lengths per batch
    params = init_params(kp)
    kparams = pack_params(params)                    # one-time, outside the call path

    out = encoder_block(x, valid_len, kparams)
    out = jax.block_until_ready(out)

    ref = encoder_block_ref(x, valid_len, params)
    np.testing.assert_allclose(np.asarray(out), np.asarray(ref),
                               rtol=1e-4, atol=1e-4)
    print("KERNEL_OK")
</pallas_src>

<mosaic_0001>
module attributes {stable_mosaic.version = 11 : i64} {
  func.func @encoder_block_kernel(%arg0: i32, %arg1: memref<2xi32, #tpu.memory_space<smem>>, %arg2: memref<16x32xf32, #tpu.memory_space<vmem>>, %arg3: memref<96x32xf32, #tpu.memory_space<vmem>>, %arg4: memref<32x32xf32, #tpu.memory_space<vmem>>, %arg5: memref<1x32xf32, #tpu.memory_space<vmem>>, %arg6: memref<1x32xf32, #tpu.memory_space<vmem>>, %arg7: memref<32x64xf32, #tpu.memory_space<vmem>>, %arg8: memref<1x64xf32, #tpu.memory_space<vmem>>, %arg9: memref<64x32xf32, #tpu.memory_space<vmem>>, %arg10: memref<1x32xf32, #tpu.memory_space<vmem>>, %arg11: memref<1x32xf32, #tpu.memory_space<vmem>>, %arg12: memref<1x32xf32, #tpu.memory_space<vmem>>, %arg13: memref<16x32xf32, #tpu.memory_space<vmem>>) attributes {dimension_semantics = [#tpu.dimension_semantics<parallel>], iteration_bounds = array<i64: 1>, scalar_prefetch = 1 : i64, scratch_operands = 0 : i64, tpu.core_type = #tpu.core_type<tc>, window_params = [{transform_indices = @transform_0, window_bounds = array<i64: 16, 32>}, {pipeline_mode = #tpu.pipeline_mode<synchronous>, transform_indices = @transform_1, window_bounds = array<i64: 96, 32>}, {pipeline_mode = #tpu.pipeline_mode<synchronous>, transform_indices = @transform_2, window_bounds = array<i64: 32, 32>}, {pipeline_mode = #tpu.pipeline_mode<synchronous>, transform_indices = @transform_3, window_bounds = array<i64: 1, 32>}, {pipeline_mode = #tpu.pipeline_mode<synchronous>, transform_indices = @transform_4, window_bounds = array<i64: 1, 32>}, {pipeline_mode = #tpu.pipeline_mode<synchronous>, transform_indices = @transform_5, window_bounds = array<i64: 32, 64>}, {pipeline_mode = #tpu.pipeline_mode<synchronous>, transform_indices = @transform_6, window_bounds = array<i64: 1, 64>}, {pipeline_mode = #tpu.pipeline_mode<synchronous>, transform_indices = @transform_7, window_bounds = array<i64: 64, 32>}, {pipeline_mode = #tpu.pipeline_mode<synchronous>, transform_indices = @transform_8, window_bounds = array<i64: 1, 32>}, {pipeline_mode = #tpu.pipeline_mode<synchronous>, transform_indices = @transform_9, window_bounds = array<i64: 1, 32>}, {pipeline_mode = #tpu.pipeline_mode<synchronous>, transform_indices = @transform_10, window_bounds = array<i64: 1, 32>}, {transform_indices = @transform_11, window_bounds = array<i64: 16, 32>}]} {
    %c0 = arith.constant 0 : index
    %c0_0 = arith.constant 0 : index
    %0 = vector.load %arg2[%c0, %c0_0] : memref<16x32xf32, #tpu.memory_space<vmem>>, vector<16x32xf32>
    %c2_i32 = arith.constant 2 : i32
    %1 = arith.muli %arg0, %c2_i32 : i32
    %2 = tpu.iota {dimensions = array<i32: 1>} : vector<8x8xi32>
    %3 = vector.extract_strided_slice %0 {offsets = [0, 0], sizes = [8, 32], strides = [1, 1]} : vector<16x32xf32> to vector<8x32xf32>
    %c0_1 = arith.constant 0 : index
    %c0_2 = arith.constant 0 : index
    %4 = vector.load %arg3[%c0_1, %c0_2] : memref<96x32xf32, #tpu.memory_space<vmem>>, vector<96x32xf32>
    %cst = arith.constant dense<0.000000e+00> : vector<96x8xf32>
    %5 = tpu.matmul %4, %3, %cst {dimension_numbers = #tpu.dot_dimension_numbers<[1], [1], [0], [0], [0, 0, 1, 0], [], []>} : vector<96x32xf32>, vector<8x32xf32>, vector<96x8xf32> -> vector<96x8xf32>
    %c0_i32 = arith.constant 0 : i32
    %6 = arith.addi %1, %c0_i32 : i32
    %7 = arith.index_cast %6 : i32 to index
    %8 = memref.load %arg1[%7] : memref<2xi32, #tpu.memory_space<smem>>
    %9 = vector.broadcast %8 : i32 to vector<8x8xi32>
    %10 = arith.cmpi sge, %2, %9 : vector<8x8xi32>
    %11 = vector.extract_strided_slice %5 {offsets = [0, 0], sizes = [8, 8], strides = [1, 1]} : vector<96x8xf32> to vector<8x8xf32>
    %12 = vector.extract_strided_slice %5 {offsets = [32, 0], sizes = [8, 8], strides = [1, 1]} : vector<96x8xf32> to vector<8x8xf32>
    %13 = vector.extract_strided_slice %5 {offsets = [64, 0], sizes = [8, 8], strides = [1, 1]} : vector<96x8xf32> to vector<8x8xf32>
    %cst_3 = arith.constant dense<0.000000e+00> : vector<8x8xf32>
    %14 = tpu.matmul %11, %12, %cst_3 {dimension_numbers = #tpu.dot_dimension_numbers<[0], [0], [1], [1], [0, 1, 1, 1], [], []>} : vector<8x8xf32>, vector<8x8xf32>, vector<8x8xf32> -> vector<8x8xf32>
    %cst_4 = arith.constant 0.353553385 : f32
    %15 = vector.broadcast %cst_4 : f32 to vector<8x8xf32>
    %16 = arith.mulf %14, %15 : vector<8x8xf32>
    %cst_5 = arith.constant -1.000000e+06 : f32
    %17 = vector.broadcast %cst_5 : f32 to vector<8x8xf32>
    %18 = arith.select %10, %17, %16 : vector<8x8xi1>, vector<8x8xf32>
    %cst_6 = arith.constant dense<0xFF800000> : vector<8xf32>
    %19 = vector.multi_reduction <maximumf>, %18, %cst_6 [1] : vector<8x8xf32> to vector<8xf32>
    %20 = vector.shape_cast %19 : vector<8xf32> to vector<8x1xf32>
    %21 = vector.broadcast %20 : vector<8x1xf32> to vector<8x8xf32>
    %22 = arith.subf %18, %21 : vector<8x8xf32>
    %23 = math.exp %22 : vector<8x8xf32>
    %cst_7 = arith.constant dense<0.000000e+00> : vector<8xf32>
    %24 = vector.multi_reduction <add>, %23, %cst_7 [1] : vector<8x8xf32> to vector<8xf32>
    %25 = vector.shape_cast %24 : vector<8xf32> to vector<8x1xf32>
    %26 = tpu.reciprocal %25 {approx = true} : vector<8x1xf32> -> vector<8x1xf32>
    %27 = arith.mulf %25, %26 : vector<8x1xf32>
    %cst_8 = arith.constant 2.000000e+00 : f32
    %28 = vector.broadcast %cst_8 : f32 to vector<8x1xf32>
    %29 = arith.subf %28, %27 : vector<8x1xf32>
    %30 = arith.mulf %26, %29 : vector<8x1xf32>
    %31 = vector.broadcast %30 : vector<8x1xf32> to vector<8x8xf32>
    %32 = arith.mulf %23, %31 : vector<8x8xf32>
    %cst_9 = arith.constant dense<0.000000e+00> : vector<8x8xf32>
    %33 = tpu.matmul %13, %32, %cst_9 {dimension_numbers = #tpu.dot_dimension_numbers<[1], [1], [0], [0], [0, 0, 1, 0], [], []>} : vector<8x8xf32>, vector<8x8xf32>, vector<8x8xf32> -> vector<8x8xf32>
    %34 = vector.extract_strided_slice %5 {offsets = [8, 0], sizes = [8, 8], strides = [1, 1]} : vector<96x8xf32> to vector<8x8xf32>
    %35 = vector.extract_strided_slice %5 {offsets = [40, 0], sizes = [8, 8], strides = [1, 1]} : vector<96x8xf32> to vector<8x8xf32>
    %36 = vector.extract_strided_slice %5 {offsets = [72, 0], sizes = [8, 8], strides = [1, 1]} : vector<96x8xf32> to vector<8x8xf32>
    %cst_10 = arith.constant dense<0.000000e+00> : vector<8x8xf32>
    %37 = tpu.matmul %34, %35, %cst_10 {dimension_numbers = #tpu.dot_dimension_numbers<[0], [0], [1], [1], [0, 1, 1, 1], [], []>} : vector<8x8xf32>, vector<8x8xf32>, vector<8x8xf32> -> vector<8x8xf32>
    %cst_11 = arith.constant 0.353553385 : f32
    %38 = vector.broadcast %cst_11 : f32 to vector<8x8xf32>
    %39 = arith.mulf %37, %38 : vector<8x8xf32>
    %cst_12 = arith.constant -1.000000e+06 : f32
    %40 = vector.broadcast %cst_12 : f32 to vector<8x8xf32>
    %41 = arith.select %10, %40, %39 : vector<8x8xi1>, vector<8x8xf32>
    %cst_13 = arith.constant dense<0xFF800000> : vector<8xf32>
    %42 = vector.multi_reduction <maximumf>, %41, %cst_13 [1] : vector<8x8xf32> to vector<8xf32>
    %43 = vector.shape_cast %42 : vector<8xf32> to vector<8x1xf32>
    %44 = vector.broadcast %43 : vector<8x1xf32> to vector<8x8xf32>
    %45 = arith.subf %41, %44 : vector<8x8xf32>
    %46 = math.exp %45 : vector<8x8xf32>
    %cst_14 = arith.constant dense<0.000000e+00> : vector<8xf32>
    %47 = vector.multi_reduction <add>, %46, %cst_14 [1] : vector<8x8xf32> to vector<8xf32>
    %48 = vector.shape_cast %47 : vector<8xf32> to vector<8x1xf32>
    %49 = tpu.reciprocal %48 {approx = true} : vector<8x1xf32> -> vector<8x1xf32>
    %50 = arith.mulf %48, %49 : vector<8x1xf32>
    %cst_15 = arith.constant 2.000000e+00 : f32
    %51 = vector.broadcast %cst_15 : f32 to vector<8x1xf32>
    %52 = arith.subf %51, %50 : vector<8x1xf32>
    %53 = arith.mulf %49, %52 : vector<8x1xf32>
    %54 = vector.broadcast %53 : vector<8x1xf32> to vector<8x8xf32>
    %55 = arith.mulf %46, %54 : vector<8x8xf32>
    %cst_16 = arith.constant dense<0.000000e+00> : vector<8x8xf32>
    %56 = tpu.matmul %36, %55, %cst_16 {dimension_numbers = #tpu.dot_dimension_numbers<[1], [1], [0], [0], [0, 0, 1, 0], [], []>} : vector<8x8xf32>, vector<8x8xf32>, vector<8x8xf32> -> vector<8x8xf32>
    %57 = vector.extract_strided_slice %5 {offsets = [16, 0], sizes = [8, 8], strides = [1, 1]} : vector<96x8xf32> to vector<8x8xf32>
    %58 = vector.extract_strided_slice %5 {offsets = [48, 0], sizes = [8, 8], strides = [1, 1]} : vector<96x8xf32> to vector<8x8xf32>
    %59 = vector.extract_strided_slice %5 {offsets = [80, 0], sizes = [8, 8], strides = [1, 1]} : vector<96x8xf32> to vector<8x8xf32>
    %cst_17 = arith.constant dense<0.000000e+00> : vector<8x8xf32>
    %60 = tpu.matmul %57, %58, %cst_17 {dimension_numbers = #tpu.dot_dimension_numbers<[0], [0], [1], [1], [0, 1, 1, 1], [], []>} : vector<8x8xf32>, vector<8x8xf32>, vector<8x8xf32> -> vector<8x8xf32>
    %cst_18 = arith.constant 0.353553385 : f32
    %61 = vector.broadcast %cst_18 : f32 to vector<8x8xf32>
    %62 = arith.mulf %60, %61 : vector<8x8xf32>
    %cst_19 = arith.constant -1.000000e+06 : f32
    %63 = vector.broadcast %cst_19 : f32 to vector<8x8xf32>
    %64 = arith.select %10, %63, %62 : vector<8x8xi1>, vector<8x8xf32>
    %cst_20 = arith.constant dense<0xFF800000> : vector<8xf32>
    %65 = vector.multi_reduction <maximumf>, %64, %cst_20 [1] : vector<8x8xf32> to vector<8xf32>
    %66 = vector.shape_cast %65 : vector<8xf32> to vector<8x1xf32>
    %67 = vector.broadcast %66 : vector<8x1xf32> to vector<8x8xf32>
    %68 = arith.subf %64, %67 : vector<8x8xf32>
    %69 = math.exp %68 : vector<8x8xf32>
    %cst_21 = arith.constant dense<0.000000e+00> : vector<8xf32>
    %70 = vector.multi_reduction <add>, %69, %cst_21 [1] : vector<8x8xf32> to vector<8xf32>
    %71 = vector.shape_cast %70 : vector<8xf32> to vector<8x1xf32>
    %72 = tpu.reciprocal %71 {approx = true} : vector<8x1xf32> -> vector<8x1xf32>
    %73 = arith.mulf %71, %72 : vector<8x1xf32>
    %cst_22 = arith.constant 2.000000e+00 : f32
    %74 = vector.broadcast %cst_22 : f32 to vector<8x1xf32>
    %75 = arith.subf %74, %73 : vector<8x1xf32>
    %76 = arith.mulf %72, %75 : vector<8x1xf32>
    %77 = vector.broadcast %76 : vector<8x1xf32> to vector<8x8xf32>
    %78 = arith.mulf %69, %77 : vector<8x8xf32>
    %cst_23 = arith.constant dense<0.000000e+00> : vector<8x8xf32>
    %79 = tpu.matmul %59, %78, %cst_23 {dimension_numbers = #tpu.dot_dimension_numbers<[1], [1], [0], [0], [0, 0, 1, 0], [], []>} : vector<8x8xf32>, vector<8x8xf32>, vector<8x8xf32> -> vector<8x8xf32>
    %80 = vector.extract_strided_slice %5 {offsets = [24, 0], sizes = [8, 8], strides = [1, 1]} : vector<96x8xf32> to vector<8x8xf32>
    %81 = vector.extract_strided_slice %5 {offsets = [56, 0], sizes = [8, 8], strides = [1, 1]} : vector<96x8xf32> to vector<8x8xf32>
    %82 = vector.extract_strided_slice %5 {offsets = [88, 0], sizes = [8, 8], strides = [1, 1]} : vector<96x8xf32> to vector<8x8xf32>
    %cst_24 = arith.constant dense<0.000000e+00> : vector<8x8xf32>
    %83 = tpu.matmul %80, %81, %cst_24 {dimension_numbers = #tpu.dot_dimension_numbers<[0], [0], [1], [1], [0, 1, 1, 1], [], []>} : vector<8x8xf32>, vector<8x8xf32>, vector<8x8xf32> -> vector<8x8xf32>
    %cst_25 = arith.constant 0.353553385 : f32
    %84 = vector.broadcast %cst_25 : f32 to vector<8x8xf32>
    %85 = arith.mulf %83, %84 : vector<8x8xf32>
    %cst_26 = arith.constant -1.000000e+06 : f32
    %86 = vector.broadcast %cst_26 : f32 to vector<8x8xf32>
    %87 = arith.select %10, %86, %85 : vector<8x8xi1>, vector<8x8xf32>
    %cst_27 = arith.constant dense<0xFF800000> : vector<8xf32>
    %88 = vector.multi_reduction <maximumf>, %87, %cst_27 [1] : vector<8x8xf32> to vector<8xf32>
    %89 = vector.shape_cast %88 : vector<8xf32> to vector<8x1xf32>
    %90 = vector.broadcast %89 : vector<8x1xf32> to vector<8x8xf32>
    %91 = arith.subf %87, %90 : vector<8x8xf32>
    %92 = math.exp %91 : vector<8x8xf32>
    %cst_28 = arith.constant dense<0.000000e+00> : vector<8xf32>
    %93 = vector.multi_reduction <add>, %92, %cst_28 [1] : vector<8x8xf32> to vector<8xf32>
    %94 = vector.shape_cast %93 : vector<8xf32> to vector<8x1xf32>
    %95 = tpu.reciprocal %94 {approx = true} : vector<8x1xf32> -> vector<8x1xf32>
    %96 = arith.mulf %94, %95 : vector<8x1xf32>
    %cst_29 = arith.constant 2.000000e+00 : f32
    %97 = vector.broadcast %cst_29 : f32 to vector<8x1xf32>
    %98 = arith.subf %97, %96 : vector<8x1xf32>
    %99 = arith.mulf %95, %98 : vector<8x1xf32>
    %100 = vector.broadcast %99 : vector<8x1xf32> to vector<8x8xf32>
    %101 = arith.mulf %92, %100 : vector<8x8xf32>
    %cst_30 = arith.constant dense<0.000000e+00> : vector<8x8xf32>
    %102 = tpu.matmul %82, %101, %cst_30 {dimension_numbers = #tpu.dot_dimension_numbers<[1], [1], [0], [0], [0, 0, 1, 0], [], []>} : vector<8x8xf32>, vector<8x8xf32>, vector<8x8xf32> -> vector<8x8xf32>
    %103 = tpu.concatenate %33, %56, %79, %102 in 0 : vector<8x8xf32>, vector<8x8xf32>, vector<8x8xf32>, vector<8x8xf32> -> vector<32x8xf32>
    %c0_31 = arith.constant 0 : index
    %c0_32 = arith.constant 0 : index
    %104 = vector.load %arg4[%c0_31, %c0_32] : memref<32x32xf32, #tpu.memory_space<vmem>>, vector<32x32xf32>
    %cst_33 = arith.constant dense<0.000000e+00> : vector<8x32xf32>
    %105 = tpu.matmul %103, %104, %cst_33 {dimension_numbers = #tpu.dot_dimension_numbers<[0], [0], [1], [1], [0, 1, 1, 1], [], []>} : vector<32x8xf32>, vector<32x32xf32>, vector<8x32xf32> -> vector<8x32xf32>
    %106 = vector.extract_strided_slice %0 {offsets = [8, 0], sizes = [8, 32], strides = [1, 1]} : vector<16x32xf32> to vector<8x32xf32>
    %c0_34 = arith.constant 0 : index
    %c0_35 = arith.constant 0 : index
    %107 = vector.load %arg3[%c0_34, %c0_35] : memref<96x32xf32, #tpu.memory_space<vmem>>, vector<96x32xf32>
    %cst_36 = arith.constant dense<0.000000e+00> : vector<96x8xf32>
    %108 = tpu.matmul %107, %106, %cst_36 {dimension_numbers = #tpu.dot_dimension_numbers<[1], [1], [0], [0], [0, 0, 1, 0], [], []>} : vector<96x32xf32>, vector<8x32xf32>, vector<96x8xf32> -> vector<96x8xf32>
    %c1_i32 = arith.constant 1 : i32
    %109 = arith.addi %1, %c1_i32 : i32
    %110 = arith.index_cast %109 : i32 to index
    %111 = memref.load %arg1[%110] : memref<2xi32, #tpu.memory_space<smem>>
    %112 = vector.broadcast %111 : i32 to vector<8x8xi32>
    %113 = arith.cmpi sge, %2, %112 : vector<8x8xi32>
    %114 = vector.extract_strided_slice %108 {offsets = [0, 0], sizes = [8, 8], strides = [1, 1]} : vector<96x8xf32> to vector<8x8xf32>
    %115 = vector.extract_strided_slice %108 {offsets = [32, 0], sizes = [8, 8], strides = [1, 1]} : vector<96x8xf32> to vector<8x8xf32>
    %116 = vector.extract_strided_slice %108 {offsets = [64, 0], sizes = [8, 8], strides = [1, 1]} : vector<96x8xf32> to vector<8x8xf32>
    %cst_37 = arith.constant dense<0.000000e+00> : vector<8x8xf32>
    %117 = tpu.matmul %114, %115, %cst_37 {dimension_numbers = #tpu.dot_dimension_numbers<[0], [0], [1], [1], [0, 1, 1, 1], [], []>} : vector<8x8xf32>, vector<8x8xf32>, vector<8x8xf32> -> vector<8x8xf32>
    %cst_38 = arith.constant 0.353553385 : f32
    %118 = vector.broadcast %cst_38 : f32 to vector<8x8xf32>
    %119 = arith.mulf %117, %118 : vector<8x8xf32>
    %cst_39 = arith.constant -1.000000e+06 : f32
    %120 = vector.broadcast %cst_39 : f32 to vector<8x8xf32>
    %121 = arith.select %113, %120, %119 : vector<8x8xi1>, vector<8x8xf32>
    %cst_40 = arith.constant dense<0xFF800000> : vector<8xf32>
    %122 = vector.multi_reduction <maximumf>, %121, %cst_40 [1] : vector<8x8xf32> to vector<8xf32>
    %123 = vector.shape_cast %122 : vector<8xf32> to vector<8x1xf32>
    %124 = vector.broadcast %123 : vector<8x1xf32> to vector<8x8xf32>
    %125 = arith.subf %121, %124 : vector<8x8xf32>
    %126 = math.exp %125 : vector<8x8xf32>
    %cst_41 = arith.constant dense<0.000000e+00> : vector<8xf32>
    %127 = vector.multi_reduction <add>, %126, %cst_41 [1] : vector<8x8xf32> to vector<8xf32>
    %128 = vector.shape_cast %127 : vector<8xf32> to vector<8x1xf32>
    %129 = tpu.reciprocal %128 {approx = true} : vector<8x1xf32> -> vector<8x1xf32>
    %130 = arith.mulf %128, %129 : vector<8x1xf32>
    %cst_42 = arith.constant 2.000000e+00 : f32
    %131 = vector.broadcast %cst_42 : f32 to vector<8x1xf32>
    %132 = arith.subf %131, %130 : vector<8x1xf32>
    %133 = arith.mulf %129, %132 : vector<8x1xf32>
    %134 = vector.broadcast %133 : vector<8x1xf32> to vector<8x8xf32>
    %135 = arith.mulf %126, %134 : vector<8x8xf32>
    %cst_43 = arith.constant dense<0.000000e+00> : vector<8x8xf32>
    %136 = tpu.matmul %116, %135, %cst_43 {dimension_numbers = #tpu.dot_dimension_numbers<[1], [1], [0], [0], [0, 0, 1, 0], [], []>} : vector<8x8xf32>, vector<8x8xf32>, vector<8x8xf32> -> vector<8x8xf32>
    %137 = vector.extract_strided_slice %108 {offsets = [8, 0], sizes = [8, 8], strides = [1, 1]} : vector<96x8xf32> to vector<8x8xf32>
    %138 = vector.extract_strided_slice %108 {offsets = [40, 0], sizes = [8, 8], strides = [1, 1]} : vector<96x8xf32> to vector<8x8xf32>
    %139 = vector.extract_strided_slice %108 {offsets = [72, 0], sizes = [8, 8], strides = [1, 1]} : vector<96x8xf32> to vector<8x8xf32>
    %cst_44 = arith.constant dense<0.000000e+00> : vector<8x8xf32>
    %140 = tpu.matmul %137, %138, %cst_44 {dimension_numbers = #tpu.dot_dimension_numbers<[0], [0], [1], [1], [0, 1, 1, 1], [], []>} : vector<8x8xf32>, vector<8x8xf32>, vector<8x8xf32> -> vector<8x8xf32>
    %cst_45 = arith.constant 0.353553385 : f32
    %141 = vector.broadcast %cst_45 : f32 to vector<8x8xf32>
    %142 = arith.mulf %140, %141 : vector<8x8xf32>
    %cst_46 = arith.constant -1.000000e+06 : f32
    %143 = vector.broadcast %cst_46 : f32 to vector<8x8xf32>
    %144 = arith.select %113, %143, %142 : vector<8x8xi1>, vector<8x8xf32>
    %cst_47 = arith.constant dense<0xFF800000> : vector<8xf32>
    %145 = vector.multi_reduction <maximumf>, %144, %cst_47 [1] : vector<8x8xf32> to vector<8xf32>
    %146 = vector.shape_cast %145 : vector<8xf32> to vector<8x1xf32>
    %147 = vector.broadcast %146 : vector<8x1xf32> to vector<8x8xf32>
    %148 = arith.subf %144, %147 : vector<8x8xf32>
    %149 = math.exp %148 : vector<8x8xf32>
    %cst_48 = arith.constant dense<0.000000e+00> : vector<8xf32>
    %150 = vector.multi_reduction <add>, %149, %cst_48 [1] : vector<8x8xf32> to vector<8xf32>
    %151 = vector.shape_cast %150 : vector<8xf32> to vector<8x1xf32>
    %152 = tpu.reciprocal %151 {approx = true} : vector<8x1xf32> -> vector<8x1xf32>
    %153 = arith.mulf %151, %152 : vector<8x1xf32>
    %cst_49 = arith.constant 2.000000e+00 : f32
    %154 = vector.broadcast %cst_49 : f32 to vector<8x1xf32>
    %155 = arith.subf %154, %153 : vector<8x1xf32>
    %156 = arith.mulf %152, %155 : vector<8x1xf32>
    %157 = vector.broadcast %156 : vector<8x1xf32> to vector<8x8xf32>
    %158 = arith.mulf %149, %157 : vector<8x8xf32>
    %cst_50 = arith.constant dense<0.000000e+00> : vector<8x8xf32>
    %159 = tpu.matmul %139, %158, %cst_50 {dimension_numbers = #tpu.dot_dimension_numbers<[1], [1], [0], [0], [0, 0, 1, 0], [], []>} : vector<8x8xf32>, vector<8x8xf32>, vector<8x8xf32> -> vector<8x8xf32>
    %160 = vector.extract_strided_slice %108 {offsets = [16, 0], sizes = [8, 8], strides = [1, 1]} : vector<96x8xf32> to vector<8x8xf32>
    %161 = vector.extract_strided_slice %108 {offsets = [48, 0], sizes = [8, 8], strides = [1, 1]} : vector<96x8xf32> to vector<8x8xf32>
    %162 = vector.extract_strided_slice %108 {offsets = [80, 0], sizes = [8, 8], strides = [1, 1]} : vector<96x8xf32> to vector<8x8xf32>
    %cst_51 = arith.constant dense<0.000000e+00> : vector<8x8xf32>
    %163 = tpu.matmul %160, %161, %cst_51 {dimension_numbers = #tpu.dot_dimension_numbers<[0], [0], [1], [1], [0, 1, 1, 1], [], []>} : vector<8x8xf32>, vector<8x8xf32>, vector<8x8xf32> -> vector<8x8xf32>
    %cst_52 = arith.constant 0.353553385 : f32
    %164 = vector.broadcast %cst_52 : f32 to vector<8x8xf32>
    %165 = arith.mulf %163, %164 : vector<8x8xf32>
    %cst_53 = arith.constant -1.000000e+06 : f32
    %166 = vector.broadcast %cst_53 : f32 to vector<8x8xf32>
    %167 = arith.select %113, %166, %165 : vector<8x8xi1>, vector<8x8xf32>
    %cst_54 = arith.constant dense<0xFF800000> : vector<8xf32>
    %168 = vector.multi_reduction <maximumf>, %167, %cst_54 [1] : vector<8x8xf32> to vector<8xf32>
    %169 = vector.shape_cast %168 : vector<8xf32> to vector<8x1xf32>
    %170 = vector.broadcast %169 : vector<8x1xf32> to vector<8x8xf32>
    %171 = arith.subf %167, %170 : vector<8x8xf32>
    %172 = math.exp %171 : vector<8x8xf32>
    %cst_55 = arith.constant dense<0.000000e+00> : vector<8xf32>
    %173 = vector.multi_reduction <add>, %172, %cst_55 [1] : vector<8x8xf32> to vector<8xf32>
    %174 = vector.shape_cast %173 : vector<8xf32> to vector<8x1xf32>
    %175 = tpu.reciprocal %174 {approx = true} : vector<8x1xf32> -> vector<8x1xf32>
    %176 = arith.mulf %174, %175 : vector<8x1xf32>
    %cst_56 = arith.constant 2.000000e+00 : f32
    %177 = vector.broadcast %cst_56 : f32 to vector<8x1xf32>
    %178 = arith.subf %177, %176 : vector<8x1xf32>
    %179 = arith.mulf %175, %178 : vector<8x1xf32>
    %180 = vector.broadcast %179 : vector<8x1xf32> to vector<8x8xf32>
    %181 = arith.mulf %172, %180 : vector<8x8xf32>
    %cst_57 = arith.constant dense<0.000000e+00> : vector<8x8xf32>
    %182 = tpu.matmul %162, %181, %cst_57 {dimension_numbers = #tpu.dot_dimension_numbers<[1], [1], [0], [0], [0, 0, 1, 0], [], []>} : vector<8x8xf32>, vector<8x8xf32>, vector<8x8xf32> -> vector<8x8xf32>
    %183 = vector.extract_strided_slice %108 {offsets = [24, 0], sizes = [8, 8], strides = [1, 1]} : vector<96x8xf32> to vector<8x8xf32>
    %184 = vector.extract_strided_slice %108 {offsets = [56, 0], sizes = [8, 8], strides = [1, 1]} : vector<96x8xf32> to vector<8x8xf32>
    %185 = vector.extract_strided_slice %108 {offsets = [88, 0], sizes = [8, 8], strides = [1, 1]} : vector<96x8xf32> to vector<8x8xf32>
    %cst_58 = arith.constant dense<0.000000e+00> : vector<8x8xf32>
    %186 = tpu.matmul %183, %184, %cst_58 {dimension_numbers = #tpu.dot_dimension_numbers<[0], [0], [1], [1], [0, 1, 1, 1], [], []>} : vector<8x8xf32>, vector<8x8xf32>, vector<8x8xf32> -> vector<8x8xf32>
    %cst_59 = arith.constant 0.353553385 : f32
    %187 = vector.broadcast %cst_59 : f32 to vector<8x8xf32>
    %188 = arith.mulf %186, %187 : vector<8x8xf32>
    %cst_60 = arith.constant -1.000000e+06 : f32
    %189 = vector.broadcast %cst_60 : f32 to vector<8x8xf32>
    %190 = arith.select %113, %189, %188 : vector<8x8xi1>, vector<8x8xf32>
    %cst_61 = arith.constant dense<0xFF800000> : vector<8xf32>
    %191 = vector.multi_reduction <maximumf>, %190, %cst_61 [1] : vector<8x8xf32> to vector<8xf32>
    %192 = vector.shape_cast %191 : vector<8xf32> to vector<8x1xf32>
    %193 = vector.broadcast %192 : vector<8x1xf32> to vector<8x8xf32>
    %194 = arith.subf %190, %193 : vector<8x8xf32>
    %195 = math.exp %194 : vector<8x8xf32>
    %cst_62 = arith.constant dense<0.000000e+00> : vector<8xf32>
    %196 = vector.multi_reduction <add>, %195, %cst_62 [1] : vector<8x8xf32> to vector<8xf32>
    %197 = vector.shape_cast %196 : vector<8xf32> to vector<8x1xf32>
    %198 = tpu.reciprocal %197 {approx = true} : vector<8x1xf32> -> vector<8x1xf32>
    %199 = arith.mulf %197, %198 : vector<8x1xf32>
    %cst_63 = arith.constant 2.000000e+00 : f32
    %200 = vector.broadcast %cst_63 : f32 to vector<8x1xf32>
    %201 = arith.subf %200, %199 : vector<8x1xf32>
    %202 = arith.mulf %198, %201 : vector<8x1xf32>
    %203 = vector.broadcast %202 : vector<8x1xf32> to vector<8x8xf32>
    %204 = arith.mulf %195, %203 : vector<8x8xf32>
    %cst_64 = arith.constant dense<0.000000e+00> : vector<8x8xf32>
    %205 = tpu.matmul %185, %204, %cst_64 {dimension_numbers = #tpu.dot_dimension_numbers<[1], [1], [0], [0], [0, 0, 1, 0], [], []>} : vector<8x8xf32>, vector<8x8xf32>, vector<8x8xf32> -> vector<8x8xf32>
    %206 = tpu.concatenate %136, %159, %182, %205 in 0 : vector<8x8xf32>, vector<8x8xf32>, vector<8x8xf32>, vector<8x8xf32> -> vector<32x8xf32>
    %c0_65 = arith.constant 0 : index
    %c0_66 = arith.constant 0 : index
    %207 = vector.load %arg4[%c0_65, %c0_66] : memref<32x32xf32, #tpu.memory_space<vmem>>, vector<32x32xf32>
    %cst_67 = arith.constant dense<0.000000e+00> : vector<8x32xf32>
    %208 = tpu.matmul %206, %207, %cst_67 {dimension_numbers = #tpu.dot_dimension_numbers<[0], [0], [1], [1], [0, 1, 1, 1], [], []>} : vector<32x8xf32>, vector<32x32xf32>, vector<8x32xf32> -> vector<8x32xf32>
    %209 = tpu.concatenate %105, %208 in 0 : vector<8x32xf32>, vector<8x32xf32> -> vector<16x32xf32>
    %210 = arith.addf %0, %209 : vector<16x32xf32>
    %c0_68 = arith.constant 0 : index
    %c0_69 = arith.constant 0 : index
    %211 = vector.load %arg5[%c0_68, %c0_69] : memref<1x32xf32, #tpu.memory_space<vmem>>, vector<1x32xf32>
    %212 = vector.shape_cast %211 : vector<1x32xf32> to vector<32xf32>
    %c0_70 = arith.constant 0 : index
    %c0_71 = arith.constant 0 : index
    %213 = vector.load %arg6[%c0_70, %c0_71] : memref<1x32xf32, #tpu.memory_space<vmem>>, vector<1x32xf32>
    %214 = vector.shape_cast %213 : vector<1x32xf32> to vector<32xf32>
    %cst_72 = arith.constant dense<0.000000e+00> : vector<16xf32>
    %215 = vector.multi_reduction <add>, %210, %cst_72 [1] : vector<16x32xf32> to vector<16xf32>
    %216 = vector.shape_cast %215 : vector<16xf32> to vector<16x1xf32>
    %cst_73 = arith.constant 3.200000e+01 : f32
    %217 = vector.broadcast %cst_73 : f32 to vector<16x1xf32>
    %218 = arith.divf %216, %217 : vector<16x1xf32>
    %219 = vector.broadcast %218 : vector<16x1xf32> to vector<16x32xf32>
    %220 = arith.subf %210, %219 : vector<16x32xf32>
    %221 = arith.mulf %220, %220 : vector<16x32xf32>
    %cst_74 = arith.constant dense<0.000000e+00> : vector<16xf32>
    %222 = vector.multi_reduction <add>, %221, %cst_74 [1] : vector<16x32xf32> to vector<16xf32>
    %223 = vector.shape_cast %222 : vector<16xf32> to vector<16x1xf32>
    %cst_75 = arith.constant 3.200000e+01 : f32
    %224 = vector.broadcast %cst_75 : f32 to vector<16x1xf32>
    %225 = arith.divf %223, %224 : vector<16x1xf32>
    %226 = vector.broadcast %218 : vector<16x1xf32> to vector<16x32xf32>
    %227 = arith.subf %210, %226 : vector<16x32xf32>
    %cst_76 = arith.constant 9.99999974E-6 : f32
    %228 = vector.broadcast %cst_76 : f32 to vector<16x1xf32>
    %229 = arith.addf %225, %228 : vector<16x1xf32>
    %230 = math.rsqrt %229 : vector<16x1xf32>
    %231 = vector.broadcast %230 : vector<16x1xf32> to vector<16x32xf32>
    %232 = arith.mulf %227, %231 : vector<16x32xf32>
    %233 = vector.shape_cast %212 : vector<32xf32> to vector<1x32xf32>
    %234 = vector.broadcast %233 : vector<1x32xf32> to vector<16x32xf32>
    %235 = arith.mulf %232, %234 : vector<16x32xf32>
    %236 = vector.shape_cast %214 : vector<32xf32> to vector<1x32xf32>
    %237 = vector.broadcast %236 : vector<1x32xf32> to vector<16x32xf32>
    %238 = arith.addf %235, %237 : vector<16x32xf32>
    %c0_77 = arith.constant 0 : index
    %c0_78 = arith.constant 0 : index
    %239 = vector.load %arg7[%c0_77, %c0_78] : memref<32x64xf32, #tpu.memory_space<vmem>>, vector<32x64xf32>
    %cst_79 = arith.constant dense<0.000000e+00> : vector<16x64xf32>
    %240 = tpu.matmul %238, %239, %cst_79 {dimension_numbers = #tpu.dot_dimension_numbers<[1], [0], [0], [1], [0, 0, 1, 1], [], []>} : vector<16x32xf32>, vector<32x64xf32>, vector<16x64xf32> -> vector<16x64xf32>
    %c0_80 = arith.constant 0 : index
    %c0_81 = arith.constant 0 : index
    %241 = vector.load %arg8[%c0_80, %c0_81] : memref<1x64xf32, #tpu.memory_space<vmem>>, vector<1x64xf32>
    %242 = vector.shape_cast %241 : vector<1x64xf32> to vector<64xf32>
    %243 = vector.shape_cast %242 : vector<64xf32> to vector<1x64xf32>
    %244 = vector.broadcast %243 : vector<1x64xf32> to vector<16x64xf32>
    %245 = arith.addf %240, %244 : vector<16x64xf32>
    %cst_82 = arith.constant 0.000000e+00 : f32
    %246 = vector.broadcast %cst_82 : f32 to vector<16x64xf32>
    %247 = arith.maximumf %245, %246 : vector<16x64xf32>
    %c0_83 = arith.constant 0 : index
    %c0_84 = arith.constant 0 : index
    %248 = vector.load %arg9[%c0_83, %c0_84] : memref<64x32xf32, #tpu.memory_space<vmem>>, vector<64x32xf32>
    %cst_85 = arith.constant dense<0.000000e+00> : vector<16x32xf32>
    %249 = tpu.matmul %247, %248, %cst_85 {dimension_numbers = #tpu.dot_dimension_numbers<[1], [0], [0], [1], [0, 0, 1, 1], [], []>} : vector<16x64xf32>, vector<64x32xf32>, vector<16x32xf32> -> vector<16x32xf32>
    %c0_86 = arith.constant 0 : index
    %c0_87 = arith.constant 0 : index
    %250 = vector.load %arg10[%c0_86, %c0_87] : memref<1x32xf32, #tpu.memory_space<vmem>>, vector<1x32xf32>
    %251 = vector.shape_cast %250 : vector<1x32xf32> to vector<32xf32>
    %252 = vector.shape_cast %251 : vector<32xf32> to vector<1x32xf32>
    %253 = vector.broadcast %252 : vector<1x32xf32> to vector<16x32xf32>
    %254 = arith.addf %249, %253 : vector<16x32xf32>
    %255 = arith.addf %238, %254 : vector<16x32xf32>
    %c0_88 = arith.constant 0 : index
    %c0_89 = arith.constant 0 : index
    %256 = vector.load %arg11[%c0_88, %c0_89] : memref<1x32xf32, #tpu.memory_space<vmem>>, vector<1x32xf32>
    %257 = vector.shape_cast %256 : vector<1x32xf32> to vector<32xf32>
    %c0_90 = arith.constant 0 : index
    %c0_91 = arith.constant 0 : index
    %258 = vector.load %arg12[%c0_90, %c0_91] : memref<1x32xf32, #tpu.memory_space<vmem>>, vector<1x32xf32>
    %259 = vector.shape_cast %258 : vector<1x32xf32> to vector<32xf32>
    %cst_92 = arith.constant dense<0.000000e+00> : vector<16xf32>
    %260 = vector.multi_reduction <add>, %255, %cst_92 [1] : vector<16x32xf32> to vector<16xf32>
    %261 = vector.shape_cast %260 : vector<16xf32> to vector<16x1xf32>
    %cst_93 = arith.constant 3.200000e+01 : f32
    %262 = vector.broadcast %cst_93 : f32 to vector<16x1xf32>
    %263 = arith.divf %261, %262 : vector<16x1xf32>
    %264 = vector.broadcast %263 : vector<16x1xf32> to vector<16x32xf32>
    %265 = arith.subf %255, %264 : vector<16x32xf32>
    %266 = arith.mulf %265, %265 : vector<16x32xf32>
    %cst_94 = arith.constant dense<0.000000e+00> : vector<16xf32>
    %267 = vector.multi_reduction <add>, %266, %cst_94 [1] : vector<16x32xf32> to vector<16xf32>
    %268 = vector.shape_cast %267 : vector<16xf32> to vector<16x1xf32>
    %cst_95 = arith.constant 3.200000e+01 : f32
    %269 = vector.broadcast %cst_95 : f32 to vector<16x1xf32>
    %270 = arith.divf %268, %269 : vector<16x1xf32>
    %271 = vector.broadcast %263 : vector<16x1xf32> to vector<16x32xf32>
    %272 = arith.subf %255, %271 : vector<16x32xf32>
    %cst_96 = arith.constant 9.99999974E-6 : f32
    %273 = vector.broadcast %cst_96 : f32 to vector<16x1xf32>
    %274 = arith.addf %270, %273 : vector<16x1xf32>
    %275 = math.rsqrt %274 : vector<16x1xf32>
    %276 = vector.broadcast %275 : vector<16x1xf32> to vector<16x32xf32>
    %277 = arith.mulf %272, %276 : vector<16x32xf32>
    %278 = vector.shape_cast %257 : vector<32xf32> to vector<1x32xf32>
    %279 = vector.broadcast %278 : vector<1x32xf32> to vector<16x32xf32>
    %280 = arith.mulf %277, %279 : vector<16x32xf32>
    %281 = vector.shape_cast %259 : vector<32xf32> to vector<1x32xf32>
    %282 = vector.broadcast %281 : vector<1x32xf32> to vector<16x32xf32>
    %283 = arith.addf %280, %282 : vector<16x32xf32>
    %c0_97 = arith.constant 0 : index
    %c0_98 = arith.constant 0 : index
    %284 = vector.load %arg13[%c0_97, %c0_98] : memref<16x32xf32, #tpu.memory_space<vmem>>, vector<16x32xf32>
    tpu.vector_store %arg13[%c0_97, %c0_98], %283 {strides = array<i32>} : memref<16x32xf32, #tpu.memory_space<vmem>>, vector<16x32xf32>,
    return
  }
  func.func @transform_0(%arg0: i32, %arg1: memref<2xi32, #tpu.memory_space<smem>>) -> (i32, i32) {
    %c0_i32 = arith.constant 0 : i32
    %c0_i32_0 = arith.constant 0 : i32
    return %arg0, %c0_i32 : i32, i32
  }
  func.func @transform_1(%arg0: i32, %arg1: memref<2xi32, #tpu.memory_space<smem>>) -> (i32, i32) {
    %c0_i32 = arith.constant 0 : i32
    %c0_i32_0 = arith.constant 0 : i32
    %c0_i32_1 = arith.constant 0 : i32
    return %c0_i32, %c0_i32_0 : i32, i32
  }
  func.func @transform_2(%arg0: i32, %arg1: memref<2xi32, #tpu.memory_space<smem>>) -> (i32, i32) {
    %c0_i32 = arith.constant 0 : i32
    %c0_i32_0 = arith.constant 0 : i32
    %c0_i32_1 = arith.constant 0 : i32
    return %c0_i32, %c0_i32_0 : i32, i32
  }
  func.func @transform_3(%arg0: i32, %arg1: memref<2xi32, #tpu.memory_space<smem>>) -> (i32, i32) {
    %c0_i32 = arith.constant 0 : i32
    %c0_i32_0 = arith.constant 0 : i32
    %c0_i32_1 = arith.constant 0 : i32
    return %c0_i32, %c0_i32_0 : i32, i32
  }
  func.func @transform_4(%arg0: i32, %arg1: memref<2xi32, #tpu.memory_space<smem>>) -> (i32, i32) {
    %c0_i32 = arith.constant 0 : i32
    %c0_i32_0 = arith.constant 0 : i32
    %c0_i32_1 = arith.constant 0 : i32
    return %c0_i32, %c0_i32_0 : i32, i32
  }
  func.func @transform_5(%arg0: i32, %arg1: memref<2xi32, #tpu.memory_space<smem>>) -> (i32, i32) {
    %c0_i32 = arith.constant 0 : i32
    %c0_i32_0 = arith.constant 0 : i32
    %c0_i32_1 = arith.constant 0 : i32
    return %c0_i32, %c0_i32_0 : i32, i32
  }
  func.func @transform_6(%arg0: i32, %arg1: memref<2xi32, #tpu.memory_space<smem>>) -> (i32, i32) {
    %c0_i32 = arith.constant 0 : i32
    %c0_i32_0 = arith.constant 0 : i32
    %c0_i32_1 = arith.constant 0 : i32
    return %c0_i32, %c0_i32_0 : i32, i32
  }
  func.func @transform_7(%arg0: i32, %arg1: memref<2xi32, #tpu.memory_space<smem>>) -> (i32, i32) {
    %c0_i32 = arith.constant 0 : i32
    %c0_i32_0 = arith.constant 0 : i32
    %c0_i32_1 = arith.constant 0 : i32
    return %c0_i32, %c0_i32_0 : i32, i32
  }
  func.func @transform_8(%arg0: i32, %arg1: memref<2xi32, #tpu.memory_space<smem>>) -> (i32, i32) {
    %c0_i32 = arith.constant 0 : i32
    %c0_i32_0 = arith.constant 0 : i32
    %c0_i32_1 = arith.constant 0 : i32
    return %c0_i32, %c0_i32_0 : i32, i32
  }
  func.func @transform_9(%arg0: i32, %arg1: memref<2xi32, #tpu.memory_space<smem>>) -> (i32, i32) {
    %c0_i32 = arith.constant 0 : i32
    %c0_i32_0 = arith.constant 0 : i32
    %c0_i32_1 = arith.constant 0 : i32
    return %c0_i32, %c0_i32_0 : i32, i32
  }
  func.func @transform_10(%arg0: i32, %arg1: memref<2xi32, #tpu.memory_space<smem>>) -> (i32, i32) {
    %c0_i32 = arith.constant 0 : i32
    %c0_i32_0 = arith.constant 0 : i32
    %c0_i32_1 = arith.constant 0 : i32
    return %c0_i32, %c0_i32_0 : i32, i32
  }
  func.func @transform_11(%arg0: i32, %arg1: memref<2xi32, #tpu.memory_space<smem>>) -> (i32, i32) {
    %c0_i32 = arith.constant 0 : i32
    %c0_i32_0 = arith.constant 0 : i32
    return %arg0, %c0_i32 : i32, i32
  }
}

</mosaic_0001>

<bundles_post_ra>
// kernel: tpu_custom_call.1
= control target key start
LH: loop header
LB: loop body
LE: loop exit
PB: predicated region body
PF: predicated region fallthrough
CT: control target
= control target key end

     0   :  { %s1488_s24 = smov [#allocation3]   ;;  %s1860_s0 = inlined_call_operand.vmem [shape: s32[2], index: 0, kind: input, shape index: {}]   ;;  %s1861_s1 = inlined_call_operand.vmem [shape: f32[16,32], index: 1, kind: input, shape index: {}]   ;;  %s1862_s2 = inlined_call_operand.vmem [shape: f32[96,32], index: 2, kind: input, shape index: {}]   ;;  %s1863_s3 = inlined_call_operand.vmem [shape: f32[32,32], index: 3, kind: input, shape index: {}]   ;;  %s1864_s4 = inlined_call_operand.vmem [shape: f32[1,32], index: 4, kind: input, shape index: {}]   ;;  %s1865_s5 = inlined_call_operand.vmem [shape: f32[1,32], index: 5, kind: input, shape index: {}]   ;;  %s1866_s6 = inlined_call_operand.vmem [shape: f32[32,64], index: 6, kind: input, shape index: {}]   ;;  %s1867_s7 = inlined_call_operand.vmem [shape: f32[1,64], index: 7, kind: input, shape index: {}]   ;;  %s1868_s8 = inlined_call_operand.vmem [shape: f32[64,32], index: 8, kind: input, shape index: {}]   ;;  %s1869_s9 = inlined_call_operand.vmem [shape: f32[1,32], index: 9, kind: input, shape index: {}]   ;;  %s1870_s10 = inlined_call_operand.vmem [shape: f32[1,32], index: 10, kind: input, shape index: {}]   ;;  %s1871_s11 = inlined_call_operand.vmem [shape: f32[1,32], index: 11, kind: input, shape index: {}]   ;;  %s1872_s12 = inlined_call_operand.hbm [shape: f32[16,32], index: 12, kind: output, shape index: {}]  }
   0x1   :  { %s18_s23 = sshll.u32 %s1860_s0, 4  ;;  %s19_s23 = int_to_ptr.vmem [resolvable:$true] %s18_s23 }
   0x2   :  { %21 = dma.vmem_to_smem %s19_s23, 16, %s1488_s24, [#allocation2] }
   0x3   :  { %1484 = dma.done.wait [#allocation2], 16 }
   0x4   :  { %1485 = vsyncadd [#allocation2], 4294967280 }
   0x5   :  { %24 = sfence }
   0x6   :  { %v1564_v0 = vld [vmem:[%s1861_s1] sm:$0xff]  ;;  %vm65_vm0 = vcmask 261120  }
   0x7   :  { %v1569_v1 = vld [vmem:[%s1862_s2] sm:$0xff]  ;;  %1336 = vmatpush.xpose.msk.msra.mxu0 %vm65_vm0, %v1564_v0 }
   0x8   :  { %25 = vsyncpa [#allocation5], 0  ;;  %v1578_v2 = vld [vmem:[%s1862_s2 + $0x8] sm:$0xff]  ;;  %v1585_v3 = vld [vmem:[%s1862_s2 + $0x10] sm:$0xff]  ;;  %vm193_vm1 = vcmask 64512   ;;  %s158_s22 = sld [smem:[#allocation3]]  ;;  %v51_v15 = vlaneseq }
   0x9   :  { %v1592_v4 = vld [vmem:[%s1862_s2 + $0x18] sm:$0xff]  ;;  %v1599_v5 = vld [vmem:[%s1862_s2 + $0x20] sm:$0xff]  ;;  %v1606_v6 = vld [vmem:[%s1862_s2 + $0x28] sm:$0xff]  ;;  %vm1228_vm8 = vcmask 523264   ;;  %s1491_s30 = smov 128   ;;  %s1492_s13 = smov 8  }
   0xa   :  { %1337 = vmatmul.msk.f32.vlgmr.msra.gmra.mxu0 %vm65_vm0, %v1569_v1  ;;  %v1614_v14 = vld [vmem:[%s1862_s2 + $0x30] sm:$0xff]  ;;  %v1618_v16 = vand.u32 127, %v51_v15  ;;  %v60_v28 = vld [vmem:[%s1862_s2 + $0x38] sm:$0xff]  ;;  %v61_v31 = vld [vmem:[%s1862_s2 + $0x40] sm:$0xff] }
   0xb   :  { %v1641_v32 = vld [vmem:[%s1862_s2 + $0x48] sm:$0xff] }
   0xc   :  { %v1657_v48 = vld [vmem:[%s1861_s1 + $0x8] sm:$0xff]  ;;  %s1324_s1 = sshll.u32 %s1872_s12, 4  ;;  %s1325_s1 = int_to_ptr.hbm [resolvable:$true] %s1324_s1 }
   0xe   :  { %v159_v17 = vstv %s158_s22 }
   0xf   :  { %vm1621_vm2 = vcmp.ge.s32.totalorder %v1618_v16, %v159_v17 }
  0x12   :  { %1338 = vmatmul.msk.f32.gmra.mxu0 %vm65_vm0, %v1578_v2 }
  0x1a   :  { %1339 = vmatmul.msk.f32.gmra.mxu0 %vm65_vm0, %v1585_v3 }
  0x22   :  { %1340 = vmatmul.msk.f32.gmra.mxu0 %vm65_vm0, %v1592_v4 }
  0x2a   :  { %1341 = vmatmul.msk.f32.gmra.mxu0 %vm65_vm0, %v1599_v5 }
  0x32   :  { %1342 = vmatmul.msk.f32.gmra.mxu0 %vm65_vm0, %v1606_v6 }
  0x3a   :  { %1343 = vmatmul.msk.f32.gmra.mxu0 %vm65_vm0, %v1614_v14 }
  0x42   :  { %1344 = vmatmul.msk.f32.gmra.mxu0 %vm65_vm0, %v60_v28 }
  0x4a   :  { %1345 = vmatmul.msk.f32.gmra.mxu0 %vm65_vm0, %v61_v31 }
  0x52   :  { %1346 = vmatmul.msk.f32.gmra.mxu0 %vm65_vm0, %v1641_v32 }
  0x87   :  { %v122_v7 = vpop.f32.mrf.mxu0 }
  0x8f   :  { %v125_v8 = vpop.f32.mrf.mxu0 }
  0x90   :  { %259 = vxpose.xlu0.b32.start.end [1/1] (short) (narrow) %v125_v8, 8 }
  0x97   :  { %v128_v9 = vpop.f32.mrf.mxu0 }
  0x98   :  { %356 = vxpose.xlu2.b32.start.end [1/1] (short) (narrow) %v128_v9, 8 }
  0x9f   :  { %v131_v10 = vpop.f32.mrf.mxu0 }
  0xa0   :  { %453 = vxpose.xlu2.b32.start.end [1/1] (short) (narrow) %v131_v10, 8 }
  0xa7   :  { %v134_v11 = vpop.f32.mrf.mxu0 }
  0xa8   :  { %212 = vmatpush.msra.mxu1 %v134_v11 }
  0xaf   :  { %v137_v12 = vpop.f32.mrf.mxu0 }
  0xb0   :  { %309 = vmatpush.msra.mxu3 %v137_v12 }
  0xb7   :  { %v140_v29 = vpop.f32.mrf.mxu0 }
  0xb8   :  { %406 = vmatpush.msrb.mxu3 %v140_v29 }
  0xbf   :  { %v143_v43 = vpop.f32.mrf.mxu0 }
  0xc7   :  { %v1649_v44 = vpop.f32.mrf.mxu0 }
  0xcf   :  { %v149_v46 = vpop.f32.mrf.mxu0 }
 0x131   :  { %v372_v30 = vpop.trf.xlu2 }
 0x134   :  { %v275_v13 = vpop.trf.xlu0 }
 0x135   :  { %1352 = vmatmul.msk.f32.vlgmr.msra.gmra.mxu3 %vm193_vm1, %v275_v13 }
 0x139   :  { %v469_v47 = vpop.trf.xlu2 }
 0x13d   :  { %1355 = vmatmul.msk.f32.vlgmr.msrb.gmra.mxu3 %vm193_vm1, %v372_v30 }
 0x1b8   :  { %v311_v18 = vpop.f32.mrf.mxu3 }
 0x1b9   :  { %v314_v20 = vmul.f32 0.35355338, %v311_v18 }
 0x1bb   :  { %v315_v21 = vsel %vm1621_vm2, -1000000.0, %v314_v20 }
 0x1bc   :  { %v316_v22 = vsel %vm193_vm1, %v315_v21, -inf }
 0x1bd   :  { %317 = vmax.xlane.f32.xlu0 %v316_v22 }
 0x1c0   :  { %v408_v39 = vpop.f32.mrf.mxu3 }
 0x1c1   :  { %v411_v40 = vmul.f32 0.35355338, %v408_v39 }
 0x1c3   :  { %v412_v41 = vsel %vm1621_vm2, -1000000.0, %v411_v40 }
 0x1c4   :  { %v413_v42 = vsel %vm193_vm1, %v412_v41, -inf }
 0x230   :  { %v318_v23 = vpop.xlane.xlu0 %317 }
 0x231   :  { %v319_v24 = vsub.f32 %v315_v21, %v318_v23 }
 0x233   :  { %v320_v25 = vmul.f32 1.442695, %v319_v24 }
 0x235   :  { %1406 = vpow2.f32 %v320_v25 }
 0x23b   :  { %v1407_v26 = vpop.eup %1406 }
 0x23c   :  { %v322_v27 = vsel %vm193_vm1, %v1407_v26, 0.0 }
 0x23d   :  { %323 = vadd.xlane.f32.xlu1 %v322_v27 }
 0x277   :  { %161 = vxpose.xlu1.b32.start.end [1/1] (short) (narrow) %v122_v7, 8 }
 0x2b0   :  { %v324_v33 = vpop.xlane.xlu1 %323 }
 0x2b1   :  { %1408 = vrcp.f32 %v324_v33 }
 0x2b7   :  { %v1409_v34 = vpop.eup %1408 }
 0x2b8   :  { %v326_v35 = vmul.f32 %v1409_v34, %v324_v33 }
 0x2ba   :  { %v327_v36 = vsub.f32 2.0, %v326_v35 }
 0x2bc   :  { %v328_v37 = vmul.f32 %v1409_v34, %v327_v36 }
 0x2be   :  { %v329_v38 = vmul.f32 %v1407_v26, %v328_v37 }
 0x2c0   :  { %1353 = vmatpush.xpose.msk.msrb.mxu1 %vm193_vm1, %v329_v38 }
 0x2d7   :  { %414 = vmax.xlane.f32.xlu1 %v413_v42 }
 0x31b   :  { %v177_v45 = vpop.trf.xlu1 }
 0x31c   :  { %1349 = vmatmul.msk.f32.vlgmr.msra.gmra.mxu1 %vm193_vm1, %v177_v45 }
 0x31d   :  { %503 = vmatpush.msra.mxu1 %v143_v43 }
 0x324   :  { %1354 = vmatmul.msk.f32.vlgmr.msrb.gmra.mxu1 %vm193_vm1, %v149_v46 }
 0x325   :  { %1362 = vmatpush.xpose.msk.msrb.mxu1 %vm65_vm0, %v1657_v48 }
 0x32c   :  { %1358 = vmatmul.msk.f32.vlgmr.msra.gmra.mxu1 %vm193_vm1, %v469_v47 }
 0x334   :  { %1363 = vmatmul.msk.f32.vlgmr.msrb.gmra.mxu1 %vm65_vm0, %v1569_v1  ;;  %v1689_v1 = vld [vmem:[%s1862_s2 + $0x50] sm:$0xff] }
 0x335   :  { %1347 = vmatmul.msk.f32.gmra.mxu0 %vm65_vm0, %v1689_v1 }
 0x33c   :  { %1364 = vmatmul.msk.f32.gmra.mxu1 %vm65_vm0, %v1578_v2  ;;  %v1696_v2 = vld [vmem:[%s1862_s2 + $0x58] sm:$0xff]  ;;  %s1375_s2 = sld [smem:[#allocation3 + $0x1]] }
 0x33d   :  { %1348 = vmatmul.msk.f32.gmra.mxu0 %vm65_vm0, %v1696_v2 }
 0x344   :  { %1365 = vmatmul.msk.f32.gmra.mxu1 %vm65_vm0, %v1585_v3 }
 0x34a   :  { %v415_v49 = vpop.xlane.xlu1 %414 }
 0x34b   :  { %v416_v50 = vsub.f32 %v412_v41, %v415_v49 }
 0x34c   :  { %1366 = vmatmul.msk.f32.gmra.mxu1 %vm65_vm0, %v1592_v4 }
 0x34d   :  { %v417_v51 = vmul.f32 1.442695, %v416_v50  ;;  %v667_v50 = vstv %s1375_s2 }
 0x34e   :  { %vm1715_vm3 = vcmp.ge.s32.totalorder %v1618_v16, %v667_v50 }
 0x34f   :  { %1410 = vpow2.f32 %v417_v51 }
 0x354   :  { %1367 = vmatmul.msk.f32.gmra.mxu1 %vm65_vm0, %v1599_v5 }
 0x355   :  { %v1411_v56 = vpop.eup %1410 }
 0x356   :  { %v419_v58 = vsel %vm193_vm1, %v1411_v56, 0.0 }
 0x35c   :  { %1368 = vmatmul.msk.f32.gmra.mxu1 %vm65_vm0, %v1606_v6 }
 0x364   :  { %1369 = vmatmul.msk.f32.gmra.mxu1 %vm65_vm0, %v1614_v14 }
 0x36c   :  { %1370 = vmatmul.msk.f32.gmra.mxu1 %vm65_vm0, %v60_v28 }
 0x374   :  { %1371 = vmatmul.msk.f32.gmra.mxu1 %vm65_vm0, %v61_v31 }
 0x399   :  { %v214_v52 = vpop.f32.mrf.mxu1 }
 0x39a   :  { %v217_v53 = vmul.f32 0.35355338, %v214_v52 }
 0x39c   :  { %v218_v54 = vsel %vm1621_vm2, -1000000.0, %v217_v53 }
 0x39d   :  { %v219_v55 = vsel %vm193_vm1, %v218_v54, -inf }
 0x39e   :  { %220 = vmax.xlane.f32.xlu2 %v219_v55 }
 0x3a1   :  { %v1672_v57 = vpop.f32.mrf.mxu1 }
 0x3a6   :  { %420 = vadd.xlane.f32.xlu2 %v419_v58 }
 0x3a9   :  { %v505_v59 = vpop.f32.mrf.mxu1 }
 0x3aa   :  { %v508_v60 = vmul.f32 0.35355338, %v505_v59 }
 0x3ac   :  { %v509_v61 = vsel %vm1621_vm2, -1000000.0, %v508_v60 }
 0x3ad   :  { %v510_v62 = vsel %vm193_vm1, %v509_v61, -inf }
 0x3ae   :  { %511 = vmax.xlane.f32.xlu0 %v510_v62 }
 0x3b1   :  { %v629_v63 = vpop.f32.mrf.mxu1 }
 0x3b2   :  { %v152_v30 = vpop.f32.mrf.mxu0 }
 0x3b9   :  { %v632_v13 = vpop.f32.mrf.mxu1 }
 0x3ba   :  { %v155_v38 = vpop.f32.mrf.mxu0 }
 0x3c1   :  { %v635_v14 = vpop.f32.mrf.mxu1 }
 0x3c2   :  { %863 = vxpose.xlu1.b32.start.end [1/1] (short) (narrow) %v635_v14, 8 }
 0x3c9   :  { %v638_v15 = vpop.f32.mrf.mxu1 }
 0x3cf   :  { %669 = vxpose.xlu2.b32.start.end [1/1] (short) (narrow) %v629_v63, 8 }
 0x3d1   :  { %v641_v34 = vpop.f32.mrf.mxu1 }
 0x3d7   :  { %960 = vxpose.xlu2.b32.start.end [1/1] (short) (narrow) %v638_v15, 8 }
 0x3d9   :  { %v644_v39 = vpop.f32.mrf.mxu1 }
 0x3e1   :  { %v647_v41 = vpop.f32.mrf.mxu1 }
 0x3e9   :  { %v650_v42 = vpop.f32.mrf.mxu1 }
 0x411   :  { %v221_v3 = vpop.xlane.xlu2 %220 }
 0x412   :  { %v222_v4 = vsub.f32 %v218_v54, %v221_v3  ;;  %v553_v3 = vld [vmem:[%s1863_s3 + $0x18] sm:$0xff] }
 0x414   :  { %v223_v5 = vmul.f32 1.442695, %v222_v4  ;;  %v552_v4 = vld [vmem:[%s1863_s3 + $0x10] sm:$0xff] }
 0x416   :  { %1412 = vpow2.f32 %v223_v5  ;;  %v551_v5 = vld [vmem:[%s1863_s3 + $0x8] sm:$0xff] }
 0x419   :  { %v421_v17 = vpop.xlane.xlu2 %420 }
 0x41c   :  { %v1413_v6 = vpop.eup %1412 }
 0x41d   :  { %v225_v7 = vsel %vm193_vm1, %v1413_v6, 0.0 }
 0x41e   :  { %226 = vadd.xlane.f32.xlu0 %v225_v7  ;;  %v550_v7 = vld [vmem:[%s1863_s3] sm:$0xff] }
 0x421   :  { %v512_v8 = vpop.xlane.xlu0 %511 }
 0x422   :  { %v513_v9 = vsub.f32 %v509_v61, %v512_v8 }
 0x424   :  { %v514_v10 = vmul.f32 1.442695, %v513_v9 }
 0x426   :  { %1414 = vpow2.f32 %v514_v10 }
 0x427   :  { %1416 = vrcp.f32 %v421_v17 }
 0x42c   :  { %v1415_v11 = vpop.eup %1414 }
 0x42d   :  { %v516_v12 = vsel %vm193_vm1, %v1415_v11, 0.0  ;;  %v1417_v18 = vpop.eup %1416 }
 0x42e   :  { %517 = vadd.xlane.f32.xlu0 %v516_v12  ;;  %v423_v20 = vmul.f32 %v1417_v18, %v421_v17 }
 0x430   :  { %v424_v22 = vsub.f32 2.0, %v423_v20 }
 0x432   :  { %v425_v25 = vmul.f32 %v1417_v18, %v424_v22 }
 0x434   :  { %v426_v28 = vmul.f32 %v1411_v56, %v425_v25 }
 0x457   :  { %766 = vxpose.xlu0.b32.start.end [1/1] (short) (narrow) %v632_v13, 8 }
 0x468   :  { %v685_v40 = vpop.trf.xlu2 }
 0x470   :  { %v976_v45 = vpop.trf.xlu2 }
 0x491   :  { %v227_v19 = vpop.xlane.xlu0 %226 }
 0x492   :  { %1418 = vrcp.f32 %v227_v19 }
 0x498   :  { %v1419_v21 = vpop.eup %1418 }
 0x499   :  { %v229_v23 = vmul.f32 %v1419_v21, %v227_v19 }
 0x49b   :  { %v230_v24 = vsub.f32 2.0, %v229_v23 }
 0x49d   :  { %v231_v26 = vmul.f32 %v1419_v21, %v230_v24 }
 0x49f   :  { %v232_v27 = vmul.f32 %v1413_v6, %v231_v26 }
 0x4a1   :  { %1350 = vmatpush.xpose.msk.msra.mxu2 %vm193_vm1, %v232_v27  ;;  %v518_v29 = vpop.xlane.xlu0 %517 }
 0x4a2   :  { %1420 = vrcp.f32 %v518_v29 }
 0x4a4   :  { %1351 = vmatmul.msk.f32.vlgmr.msra.gmra.mxu2 %vm193_vm1, %v1649_v44  ;;  %v879_v44 = vpop.trf.xlu1 }
 0x4a5   :  { %1356 = vmatpush.xpose.msk.msrb.mxu2 %vm193_vm1, %v426_v28 }
 0x4a8   :  { %v1421_v31 = vpop.eup %1420 }
 0x4a9   :  { %v520_v33 = vmul.f32 %v1421_v31, %v518_v29  ;;  %601 = vmatpush.msra.mxu2 %v553_v3 }
 0x4ab   :  { %v521_v35 = vsub.f32 2.0, %v520_v33  ;;  %602 = vmatpush.msra.mxu2 %v552_v4 }
 0x4ac   :  { %1357 = vmatmul.msk.f32.vlgmr.msrb.gmra.mxu2 %vm193_vm1, %v152_v30 }
 0x4ad   :  { %v522_v36 = vmul.f32 %v1421_v31, %v521_v35  ;;  %603 = vmatpush.msra.mxu2 %v551_v5 }
 0x4af   :  { %v523_v37 = vmul.f32 %v1415_v11, %v522_v36  ;;  %604 = vmatpush.msra.mxu2 %v550_v7 }
 0x4b1   :  { %1359 = vmatpush.xpose.msk.msra.mxu3 %vm193_vm1, %v523_v37  ;;  %1393 = vmatpush.xpose.msk.msrb.mxu2 %vm65_vm0, %v1657_v48 }
 0x4b4   :  { %1360 = vmatmul.msk.f32.vlgmr.msra.gmra.mxu3 %vm193_vm1, %v155_v38 }
 0x4b5   :  { %719 = vmatpush.msrb.mxu3 %v641_v34 }
 0x4b7   :  { %816 = vmatpush.msra.mxu3 %v644_v39  ;;  %v653_v39 = vpop.f32.mrf.mxu1 }
 0x4bc   :  { %1376 = vmatmul.msk.f32.vlgmr.msrb.gmra.mxu3 %vm193_vm1, %v685_v40 }
 0x4bd   :  { %913 = vmatpush.msrb.mxu3 %v647_v41 }
 0x4fb   :  { %v782_v43 = vpop.trf.xlu0 }
 0x4fc   :  { %1379 = vmatmul.msk.f32.vlgmr.msra.gmra.mxu3 %vm193_vm1, %v782_v43 }
 0x4fd   :  { %1010 = vmatpush.msra.mxu3 %v650_v42 }
 0x504   :  { %1382 = vmatmul.msk.f32.vlgmr.msrb.gmra.mxu3 %vm193_vm1, %v879_v44 }
 0x505   :  { %1104 = vmatpush.msrb.mxu3 %v553_v3 }
 0x507   :  { %1105 = vmatpush.msrb.mxu3 %v552_v4 }
 0x509   :  { %1106 = vmatpush.msrb.mxu3 %v551_v5 }
 0x50b   :  { %1107 = vmatpush.msrb.mxu3 %v550_v7 }
 0x50c   :  { %1385 = vmatmul.msk.f32.vlgmr.msra.gmra.mxu3 %vm193_vm1, %v976_v45 }
 0x527   :  { %v256_v46 = vpop.f32.mrf.mxu2 }
 0x528   :  { %554 = vxpose.xlu0.b32.start [1/4] (short) (narrow) %v256_v46, 8 }
 0x52f   :  { %v450_v47 = vpop.f32.mrf.mxu2 }
 0x530   :  { %555 = vxpose.xlu0.b32.cont [2/4] (short) (narrow) %v1672_v57, 8 }
 0x537   :  { %v547_v49 = vpop.f32.mrf.mxu3 }
 0x538   :  { %556 = vxpose.xlu0.b32.cont [3/4] (short) (narrow) %v450_v47, 8 }
 0x53f   :  { %v721_v51 = vpop.f32.mrf.mxu3 }
 0x540   :  { %v724_v53 = vmul.f32 0.35355338, %v721_v51  ;;  %557 = vxpose.xlu0.b32.end [4/4] (short) (narrow) %v547_v49, 8  ;;  %v1489_v49 = vmov 32.0  }
 0x542   :  { %v725_v54 = vsel %vm1715_vm3, -1000000.0, %v724_v53 }
 0x543   :  { %v726_v55 = vsel %vm193_vm1, %v725_v54, -inf }
 0x544   :  { %727 = vmax.xlane.f32.xlu2 %v726_v55 }
 0x57f   :  { %v818_v56 = vpop.f32.mrf.mxu3 }
 0x580   :  { %v821_v6 = vmul.f32 0.35355338, %v818_v56 }
 0x582   :  { %v822_v8 = vsel %vm1715_vm3, -1000000.0, %v821_v6 }
 0x583   :  { %v823_v9 = vsel %vm193_vm1, %v822_v8, -inf }
 0x587   :  { %v915_v57 = vpop.f32.mrf.mxu3 }
 0x588   :  { %v918_v58 = vmul.f32 0.35355338, %v915_v57 }
 0x58a   :  { %v919_v59 = vsel %vm1715_vm3, -1000000.0, %v918_v58 }
 0x58b   :  { %v920_v60 = vsel %vm193_vm1, %v919_v59, -inf }
 0x58c   :  { %921 = vmax.xlane.f32.xlu1 %v920_v60 }
 0x58f   :  { %v1012_v16 = vpop.f32.mrf.mxu3 }
 0x590   :  { %v1015_v61 = vmul.f32 0.35355338, %v1012_v16 }
 0x592   :  { %v1016_v62 = vsel %vm1715_vm3, -1000000.0, %v1015_v61 }
 0x593   :  { %v1017_v63 = vsel %vm193_vm1, %v1016_v62, -inf }
 0x594   :  { %1018 = vmax.xlane.f32.xlu2 %v1017_v63 }
 0x5b1   :  { %824 = vmax.xlane.f32.xlu0 %v823_v9 }
 0x5b7   :  { %v728_v10 = vpop.xlane.xlu2 %727 }
 0x5b8   :  { %v729_v11 = vsub.f32 %v725_v54, %v728_v10 }
 0x5ba   :  { %v730_v12 = vmul.f32 1.442695, %v729_v11 }
 0x5bc   :  { %1422 = vpow2.f32 %v730_v12  ;;  %v1180_v12 = vld [vmem:[%s1866_s6 + $0x18] sm:$0xff] }
 0x5c2   :  { %v1423_v13 = vpop.eup %1422 }
 0x5c3   :  { %v732_v14 = vsel %vm193_vm1, %v1423_v13, 0.0 }
 0x5c4   :  { %733 = vadd.xlane.f32.xlu2 %v732_v14  ;;  %v1179_v14 = vld [vmem:[%s1866_s6 + $0x10] sm:$0xff] }
 0x5cc   :  { %v570_v15 = vpop.trf.xlu0 }
 0x5cd   :  { %1361 = vmatmul.msk.f32.vlgmr.msra.gmra.mxu2 %vm65_vm0, %v570_v15  ;;  %v1178_v15 = vld [vmem:[%s1866_s6 + $0x8] sm:$0xff] }
 0x5d5   :  { %1372 = vmatmul.msk.f32.vlgmr.msrb.gmra.mxu2 %vm65_vm0, %v1641_v32 }
 0x5dd   :  { %1373 = vmatmul.msk.f32.gmra.mxu2 %vm65_vm0, %v1689_v1 }
 0x5e5   :  { %1374 = vmatmul.msk.f32.gmra.mxu2 %vm65_vm0, %v1696_v2 }
 0x5ff   :  { %v922_v17 = vpop.xlane.xlu1 %921 }
 0x600   :  { %v923_v18 = vsub.f32 %v919_v59, %v922_v17  ;;  %v1177_v17 = vld [vmem:[%s1866_s6] sm:$0xff] }
 0x602   :  { %v924_v19 = vmul.f32 1.442695, %v923_v18 }
 0x604   :  { %1424 = vpow2.f32 %v924_v19 }
 0x607   :  { %v1019_v22 = vpop.xlane.xlu2 %1018 }
 0x608   :  { %v1020_v25 = vsub.f32 %v1016_v62, %v1019_v22 }
 0x60a   :  { %v1425_v20 = vpop.eup %1424  ;;  %v1021_v32 = vmul.f32 1.442695, %v1020_v25 }
 0x60b   :  { %v926_v21 = vsel %vm193_vm1, %v1425_v20, 0.0 }
 0x60c   :  { %927 = vadd.xlane.f32.xlu1 %v926_v21 }
 0x624   :  { %v825_v23 = vpop.xlane.xlu0 %824 }
 0x625   :  { %v826_v24 = vsub.f32 %v822_v8, %v825_v23 }
 0x627   :  { %v827_v26 = vmul.f32 1.442695, %v826_v24 }
 0x629   :  { %1426 = vpow2.f32 %v827_v26 }
 0x62a   :  { %1428 = vpow2.f32 %v1021_v32 }
 0x62f   :  { %v1427_v27 = vpop.eup %1426 }
 0x630   :  { %v829_v1 = vsel %vm193_vm1, %v1427_v27, 0.0  ;;  %v1429_v2 = vpop.eup %1428 }
 0x631   :  { %830 = vadd.xlane.f32.xlu2 %v829_v1  ;;  %v1023_v29 = vsel %vm193_vm1, %v1429_v2, 0.0  ;;  %v1786_v1 = vld [vmem:[%s1864_s4] ss:$0 sm:$0xff] }
 0x637   :  { %v734_v28 = vpop.xlane.xlu2 %733 }
 0x638   :  { %1430 = vrcp.f32 %v734_v28 }
 0x639   :  { %1024 = vadd.xlane.f32.xlu2 %v1023_v29  ;;  %v1791_v29 = vld [vmem:[%s1865_s5] ss:$0 sm:$0xff] }
 0x63e   :  { %v1431_v30 = vpop.eup %1430 }
 0x63f   :  { %v736_v31 = vmul.f32 %v1431_v30, %v734_v28 }
 0x641   :  { %v737_v33 = vsub.f32 2.0, %v736_v31 }
 0x643   :  { %v738_v34 = vmul.f32 %v1431_v30, %v737_v33  ;;  %v1223_v33 = vld [vmem:[%s1868_s8 + $0x38] sm:$0xff] }
 0x644   :  { %1243 = vmatpush.msra.mxu3 %v1223_v33 }
 0x645   :  { %v739_v35 = vmul.f32 %v1423_v13, %v738_v34  ;;  %v1222_v34 = vld [vmem:[%s1868_s8 + $0x30] sm:$0xff] }
 0x646   :  { %1244 = vmatpush.msra.mxu3 %v1222_v34 }
 0x647   :  { %1377 = vmatpush.xpose.msk.msra.mxu2 %vm193_vm1, %v739_v35  ;;  %v1221_v35 = vld [vmem:[%s1868_s8 + $0x28] sm:$0xff] }
 0x648   :  { %1245 = vmatpush.msra.mxu3 %v1221_v35 }
 0x64a   :  { %1378 = vmatmul.msk.f32.vlgmr.msra.gmra.mxu2 %vm193_vm1, %v653_v39  ;;  %v1217_v39 = vld [vmem:[%s1868_s8 + $0x8] sm:$0xff] }
 0x650   :  { %v606_v36 = vpop.f32.mrf.mxu2 }
 0x651   :  { %v1112_v37 = vadd.f32 %v606_v36, %v1564_v0  ;;  %v1220_v36 = vld [vmem:[%s1868_s8 + $0x20] sm:$0xff] }
 0x652   :  { %1246 = vmatpush.msra.mxu3 %v1220_v36 }
 0x653   :  { %v1116_v38 = vsel %vm65_vm0, %v1112_v37, 0.0 }
 0x654   :  { %1117 = vadd.xlane.f32.xlu0 %v1116_v38  ;;  %v1218_v38 = vld [vmem:[%s1868_s8 + $0x10] sm:$0xff] }
 0x658   :  { %v656_v52 = vpop.f32.mrf.mxu2 }
 0x660   :  { %v659_v62 = vpop.f32.mrf.mxu2 }
 0x668   :  { %v662_v4 = vpop.f32.mrf.mxu2 }
 0x67f   :  { %v928_v40 = vpop.xlane.xlu1 %927 }
 0x680   :  { %1432 = vrcp.f32 %v928_v40 }
 0x686   :  { %v1433_v41 = vpop.eup %1432 }
 0x687   :  { %v930_v43 = vmul.f32 %v1433_v41, %v928_v40  ;;  %v1216_v40 = vld [vmem:[%s1868_s8] sm:$0xff] }
 0x689   :  { %v931_v45 = vsub.f32 2.0, %v930_v43 }
 0x68b   :  { %v932_v50 = vmul.f32 %v1433_v41, %v931_v45 }
 0x68d   :  { %v933_v56 = vmul.f32 %v1425_v20, %v932_v50 }
 0x6a4   :  { %v831_v42 = vpop.xlane.xlu2 %830 }
 0x6a5   :  { %1434 = vrcp.f32 %v831_v42 }
 0x6a6   :  { %1436 = vrcp.f32 %v1489_v49 }
 0x6ab   :  { %v1435_v44 = vpop.eup %1434 }
 0x6ac   :  { %v833_v46 = vmul.f32 %v1435_v44, %v831_v42  ;;  %v1025_v47 = vpop.xlane.xlu2 %1024  ;;  %v1437_v53 = vpop.eup %1436  ;;  %v1824_v42 = vld [vmem:[%s1867_s7] ss:$0 sm:$0xff] }
 0x6ad   :  { %1438 = vrcp.f32 %v1025_v47  ;;  %v1123_v58 = vmul.f32 32.0, %v1437_v53  ;;  %vm1127_vm4 = vweird.f32 %v1437_v53 }
 0x6ae   :  { %v834_v0 = vsub.f32 2.0, %v833_v46 }
 0x6af   :  { %v1124_v16 = vsub.f32 1.0, %v1123_v58 }
 0x6b0   :  { %v835_v51 = vmul.f32 %v1435_v44, %v834_v0  ;;  %v1403_v0 = vld [vmem:[%s1869_s9] ss:$0 sm:$0xff] }
 0x6b1   :  { %v1125_v63 = vmul.f32 %v1437_v53, %v1124_v16 }
 0x6b2   :  { %v836_v54 = vmul.f32 %v1427_v27, %v835_v51 }
 0x6b3   :  { %v1439_v55 = vpop.eup %1438  ;;  %v1126_v3 = vadd.f32 %v1437_v53, %v1125_v63 }
 0x6b4   :  { %v1027_v57 = vmul.f32 %v1439_v55, %v1025_v47  ;;  %1380 = vmatpush.xpose.msk.msrb.mxu2 %vm193_vm1, %v836_v54 }
 0x6b5   :  { %v1765_v5 = vsel %vm1127_vm4, %v1437_v53, %v1126_v3 }
 0x6b6   :  { %v1028_v59 = vsub.f32 2.0, %v1027_v57 }
 0x6b7   :  { %1381 = vmatmul.msk.f32.vlgmr.msrb.gmra.mxu2 %vm193_vm1, %v656_v52 }
 0x6b8   :  { %1383 = vmatpush.xpose.msk.msra.mxu2 %vm193_vm1, %v933_v56  ;;  %v1029_v60 = vmul.f32 %v1439_v55, %v1028_v59 }
 0x6ba   :  { %v1030_v61 = vmul.f32 %v1429_v2, %v1029_v60 }
 0x6bc   :  { %1386 = vmatpush.xpose.msk.msrb.mxu2 %vm193_vm1, %v1030_v61 }
 0x6bf   :  { %1384 = vmatmul.msk.f32.vlgmr.msra.gmra.mxu2 %vm193_vm1, %v659_v62 }
 0x6c0   :  { %1203 = vmatpush.msra.mxu2 %v1180_v12 }
 0x6c2   :  { %1204 = vmatpush.msra.mxu2 %v1179_v14 }
 0x6c4   :  { %1205 = vmatpush.msra.mxu2 %v1178_v15 }
 0x6c6   :  { %1206 = vmatpush.msra.mxu2 %v1177_v17 }
 0x6c7   :  { %v1118_v6 = vpop.xlane.xlu0 %1117  ;;  %1387 = vmatmul.msk.f32.vlgmr.msrb.gmra.mxu2 %vm193_vm1, %v662_v4 }
 0x6c8   :  { %v1129_v7 = vmul.f32 %v1765_v5, %v1118_v6 }
 0x6ca   :  { %v1131_v8 = vsub.f32 %v1112_v37, %v1129_v7  ;;  %v1219_v37 = vld [vmem:[%s1868_s8 + $0x18] sm:$0xff] }
 0x6cb   :  { %1247 = vmatpush.msra.mxu3 %v1219_v37 }
 0x6cc   :  { %v1133_v9 = vmul.f32 %v1131_v8, %v1131_v8 }
 0x6cd   :  { %v763_v11 = vpop.f32.mrf.mxu2  ;;  %1248 = vmatpush.msra.mxu3 %v1218_v38 }
 0x6ce   :  { %v1135_v10 = vsel %vm65_vm0, %v1133_v9, 0.0  ;;  %1057 = vxpose.xlu1.b32.start [1/4] (short) (narrow) %v763_v11, 8 }
 0x6cf   :  { %1136 = vadd.xlane.f32.xlu0 %v1135_v10  ;;  %1249 = vmatpush.msra.mxu3 %v1217_v39 }
 0x6d1   :  { %1250 = vmatpush.msra.mxu3 %v1216_v40 }
 0x73a   :  { %v860_v13 = vpop.f32.mrf.mxu2 }
 0x73b   :  { %1058 = vxpose.xlu1.b32.cont [2/4] (short) (narrow) %v860_v13, 8 }
 0x742   :  { %v1137_v18 = vpop.xlane.xlu0 %1136  ;;  %v957_v19 = vpop.f32.mrf.mxu2 }
 0x743   :  { %v1141_v20 = vmul.f32 %v1137_v18, %v1765_v5  ;;  %1059 = vxpose.xlu1.b32.cont [3/4] (short) (narrow) %v957_v19, 8 }
 0x745   :  { %v1143_v21 = vadd.f32 1e-05, %v1141_v20 }
 0x747   :  { %1440 = vrsqrt.f32 %v1143_v21  ;;  %vm1151_vm6 = vweird.f32 %v1143_v21 }
 0x74a   :  { %v1054_v22 = vpop.f32.mrf.mxu2 }
 0x74b   :  { %1060 = vxpose.xlu1.b32.end [4/4] (short) (narrow) %v1054_v22, 8 }
 0x74d   :  { %v1441_v23 = vpop.eup %1440 }
 0x74e   :  { %v1146_v24 = vmul.f32 %v1441_v23, %v1143_v21  ;;  %vm1152_vm5 = vweird.f32 %v1441_v23 }
 0x74f   :  { %vm1153_vm7 = vmor %vm1151_vm6, %vm1152_vm5 }
 0x750   :  { %v1147_v25 = vmul.f32 %v1441_v23, %v1146_v24 }
 0x752   :  { %v1148_v26 = vmul.f32 0.5, %v1147_v25  ;;  %v1404_v25 = vld [vmem:[%s1870_s10] ss:$0 sm:$0xff]  ;;  %s1490_s10 = smov [#allocation4]  }
 0x754   :  { %v1149_v32 = vsub.f32 1.5, %v1148_v26 }
 0x756   :  { %v1150_v27 = vmul.f32 %v1441_v23, %v1149_v32 }
 0x758   :  { %v1154_v2 = vsel %vm1153_vm7, %v1441_v23, %v1150_v27  ;;  %v1405_v27 = vld [vmem:[%s1871_s11] ss:$0 sm:$0xff]  ;;  %s1322_s11 = sshll.u32 %s1490_s10, 4  ;;  %s1323_s11 = int_to_ptr.vmem [resolvable:$true] %s1322_s11 }
 0x759   :  { %v1165_v28 = vmul.f32 %v1154_v2, %v1131_v8 }
 0x75b   :  { %v1170_v30 = vmul.f32 %v1786_v1, %v1165_v28 }
 0x75d   :  { %v1175_v31 = vadd.f32 %v1791_v29, %v1170_v30 }
 0x75f   :  { %1389 = vmatmul.msk.f32.vlgmr.msra.gmra.mxu2 %vm65_vm0, %v1175_v31 }
 0x7d7   :  { %v1073_v41 = vpop.trf.xlu1 }
 0x7d8   :  { %1388 = vmatmul.msk.f32.vlgmr.msrb.gmra.mxu3 %vm65_vm0, %v1073_v41 }
 0x7e2   :  { %v1208_v43 = vpop.f32.mrf.mxu2 }
 0x7e3   :  { %v1209_v44 = vadd.f32 %v1824_v42, %v1208_v43 }
 0x7e5   :  { %v1214_v45 = vmax.f32 %v1209_v44, 0.0 }
 0x7e7   :  { %1391 = vmatmul.msk.f32.vlgmr.msra.gmra.mxu3 %vm1228_vm8, %v1214_v45 }
 0x85b   :  { %v1109_v46 = vpop.f32.mrf.mxu3 }
 0x85c   :  { %v1113_v47 = vadd.f32 %v1109_v46, %v1657_v48 }
 0x85e   :  { %v1119_v49 = vsel %vm65_vm0, %v1113_v47, 0.0 }
 0x85f   :  { %1120 = vadd.xlane.f32.xlu2 %v1119_v49 }
 0x86a   :  { %v1252_v50 = vpop.f32.mrf.mxu3 }
 0x86b   :  { %v1253_v51 = vadd.f32 %v1403_v0, %v1252_v50 }
 0x86d   :  { %v1258_v52 = vadd.f32 %v1253_v51, %v1175_v31 }
 0x86f   :  { %v1262_v53 = vsel %vm65_vm0, %v1258_v52, 0.0 }
 0x870   :  { %1263 = vadd.xlane.f32.xlu0 %v1262_v53 }
 0x8d2   :  { %v1121_v54 = vpop.xlane.xlu2 %1120 }
 0x8d3   :  { %v1130_v55 = vmul.f32 %v1765_v5, %v1121_v54 }
 0x8d5   :  { %v1132_v56 = vsub.f32 %v1113_v47, %v1130_v55 }
 0x8d7   :  { %v1134_v57 = vmul.f32 %v1132_v56, %v1132_v56 }
 0x8d9   :  { %v1138_v48 = vsel %vm65_vm0, %v1134_v57, 0.0 }
 0x8da   :  { %1139 = vadd.xlane.f32.xlu2 %v1138_v48 }
 0x8e3   :  { %v1264_v58 = vpop.xlane.xlu0 %1263 }
 0x8e4   :  { %v1268_v59 = vmul.f32 %v1264_v58, %v1765_v5 }
 0x8e6   :  { %v1270_v60 = vsub.f32 %v1258_v52, %v1268_v59 }
 0x8e8   :  { %v1272_v16 = vmul.f32 %v1270_v60, %v1270_v60 }
 0x8ea   :  { %v1274_v61 = vsel %vm65_vm0, %v1272_v16, 0.0 }
 0x8eb   :  { %1275 = vadd.xlane.f32.xlu0 %v1274_v61 }
 0x94d   :  { %v1140_v62 = vpop.xlane.xlu2 %1139 }
 0x94e   :  { %v1142_v63 = vmul.f32 %v1140_v62, %v1765_v5 }
 0x950   :  { %v1144_v3 = vadd.f32 1e-05, %v1142_v63 }
 0x952   :  { %1442 = vrsqrt.f32 %v1144_v3  ;;  %vm1161_vm10 = vweird.f32 %v1144_v3 }
 0x958   :  { %v1443_v4 = vpop.eup %1442 }
 0x959   :  { %v1156_v6 = vmul.f32 %v1443_v4, %v1144_v3  ;;  %vm1162_vm9 = vweird.f32 %v1443_v4 }
 0x95a   :  { %vm1163_vm11 = vmor %vm1161_vm10, %vm1162_vm9 }
 0x95b   :  { %v1157_v7 = vmul.f32 %v1443_v4, %v1156_v6 }
 0x95d   :  { %v1158_v8 = vmul.f32 0.5, %v1157_v7 }
 0x95e   :  { %v1276_v9 = vpop.xlane.xlu0 %1275 }
 0x95f   :  { %v1159_v10 = vsub.f32 1.5, %v1158_v8  ;;  %v1280_v11 = vmul.f32 %v1276_v9, %v1765_v5 }
 0x961   :  { %v1160_v12 = vmul.f32 %v1443_v4, %v1159_v10  ;;  %v1282_v13 = vadd.f32 1e-05, %v1280_v11 }
 0x963   :  { %v1164_v14 = vsel %vm1163_vm11, %v1443_v4, %v1160_v12  ;;  %1444 = vrsqrt.f32 %v1282_v13  ;;  %vm1290_vm13 = vweird.f32 %v1282_v13 }
 0x964   :  { %v1166_v15 = vmul.f32 %v1164_v14, %v1132_v56 }
 0x966   :  { %v1171_v17 = vmul.f32 %v1786_v1, %v1166_v15 }
 0x968   :  { %v1176_v18 = vadd.f32 %v1791_v29, %v1171_v17 }
 0x969   :  { %v1445_v19 = vpop.eup %1444 }
 0x96a   :  { %v1285_v20 = vmul.f32 %v1445_v19, %v1282_v13  ;;  %1390 = vmatmul.msk.f32.gmra.mxu2 %vm65_vm0, %v1176_v18  ;;  %vm1291_vm12 = vweird.f32 %v1445_v19 }
 0x96b   :  { %vm1292_vm14 = vmor %vm1290_vm13, %vm1291_vm12 }
 0x96c   :  { %v1286_v21 = vmul.f32 %v1445_v19, %v1285_v20 }
 0x96e   :  { %v1287_v22 = vmul.f32 0.5, %v1286_v21 }
 0x970   :  { %v1288_v23 = vsub.f32 1.5, %v1287_v22 }
 0x972   :  { %v1289_v24 = vmul.f32 %v1445_v19, %v1288_v23 }
 0x974   :  { %v1293_v26 = vsel %vm1292_vm14, %v1445_v19, %v1289_v24 }
 0x975   :  { %v1304_v32 = vmul.f32 %v1293_v26, %v1270_v60 }
 0x977   :  { %v1309_v1 = vmul.f32 %v1404_v25, %v1304_v32 }
 0x979   :  { %v1314_v2 = vadd.f32 %v1405_v27, %v1309_v1 }
 0x97b   :  { %1316 = vst.msk [vmem:[#allocation4] sm:$0xff] %vm65_vm0, %v1314_v2 }
 0x9ed   :  { %v1211_v28 = vpop.f32.mrf.mxu2 }
 0x9ee   :  { %v1212_v29 = vadd.f32 %v1824_v42, %v1211_v28 }
 0x9f0   :  { %v1215_v30 = vmax.f32 %v1212_v29, 0.0 }
 0x9f2   :  { %1392 = vmatmul.msk.f32.gmra.mxu3 %vm1228_vm8, %v1215_v30 }
 0xa75   :  { %v1255_v31 = vpop.f32.mrf.mxu3 }
 0xa76   :  { %v1256_v33 = vadd.f32 %v1403_v0, %v1255_v31 }
 0xa78   :  { %v1259_v34 = vadd.f32 %v1256_v33, %v1176_v18 }
 0xa7a   :  { %v1265_v35 = vsel %vm65_vm0, %v1259_v34, 0.0 }
 0xa7b   :  { %1266 = vadd.xlane.f32.xlu2 %v1265_v35 }
 0xaee   :  { %v1267_v36 = vpop.xlane.xlu2 %1266 }
 0xaef   :  { %v1269_v37 = vmul.f32 %v1267_v36, %v1765_v5 }
 0xaf1   :  { %v1271_v38 = vsub.f32 %v1259_v34, %v1269_v37 }
 0xaf3   :  { %v1273_v39 = vmul.f32 %v1271_v38, %v1271_v38 }
 0xaf5   :  { %v1277_v40 = vsel %vm65_vm0, %v1273_v39, 0.0 }
 0xaf6   :  { %1278 = vadd.xlane.f32.xlu2 %v1277_v40 }
 0xb69   :  { %v1279_v41 = vpop.xlane.xlu2 %1278 }
 0xb6a   :  { %v1281_v42 = vmul.f32 %v1279_v41, %v1765_v5 }
 0xb6c   :  { %v1283_v43 = vadd.f32 1e-05, %v1281_v42 }
 0xb6e   :  { %1446 = vrsqrt.f32 %v1283_v43  ;;  %vm1300_vm1 = vweird.f32 %v1283_v43 }
 0xb74   :  { %v1447_v44 = vpop.eup %1446 }
 0xb75   :  { %v1295_v45 = vmul.f32 %v1447_v44, %v1283_v43  ;;  %vm1301_vm15 = vweird.f32 %v1447_v44 }
 0xb76   :  { %vm1302_vm2 = vmor %vm1300_vm1, %vm1301_vm15 }
 0xb77   :  { %v1296_v46 = vmul.f32 %v1447_v44, %v1295_v45 }
 0xb79   :  { %v1297_v47 = vmul.f32 0.5, %v1296_v46 }
 0xb7b   :  { %v1298_v49 = vsub.f32 1.5, %v1297_v47 }
 0xb7d   :  { %v1299_v0 = vmul.f32 %v1447_v44, %v1298_v49 }
 0xb7f   :  { %v1303_v50 = vsel %vm1302_vm2, %v1447_v44, %v1299_v0 }
 0xb80   :  { %v1305_v51 = vmul.f32 %v1303_v50, %v1271_v38 }
 0xb82   :  { %v1310_v5 = vmul.f32 %v1404_v25, %v1305_v51 }
 0xb84   :  { %v1315_v52 = vadd.f32 %v1405_v27, %v1310_v5 }
 0xb86   :  { %1317 = vst.msk [vmem:[#allocation4 + $0x8] sm:$0xff] %vm65_vm0, %v1315_v52 }
 0xb87   :  { %1330 = dma.vmem_to_hbm [thread:$0]  %s1323_s11, 256, %s1325_s1, [#allocation5], %s1491_s30, %s1491_s30, %s1492_s13  }
 0xb88   :  { %1486 = dma.done.wait [#allocation5], 256  }
 0xb89   :  { %1487 = vsyncadd [#allocation5], 4294967040 }
 0xb8a   :  { %1335 = vsyncpa [#allocation5], 1 }

</bundles_post_ra>
